<compile_context>
chip_gen: v7x
topology: tpu7x:2x2x1
jax: 0.10.0
libtpu: 0.0.40
codegen_flags: <defaults>
</compile_context>

<pallas_src>
import numpy as np

import jax
import jax.numpy as jnp
from jax.experimental import pallas as pl
from jax.experimental.pallas import tpu as pltpu


# ---------------------------------------------------------------------------
# Fused backbone Pallas kernel: 4 x (MXU matmul + bias + ReLU), all
# intermediates kept on-chip.
# ---------------------------------------------------------------------------
def _fused_backbone_kernel(x_ref,
                           a1_ref, b1_ref, a2_ref, b2_ref,
                           a3_ref, b3_ref, a4_ref, b4_ref,
                           res2_ref, res4_ref):
    def stage(x_bf16, a_ref, b_ref):
        acc = jnp.dot(x_bf16, a_ref[...], preferred_element_type=jnp.float32)
        return jnp.maximum(acc + b_ref[...], 0.0)           # f32

    y1 = stage(x_ref[...], a1_ref, b1_ref)                  # /2
    y2 = stage(y1.astype(jnp.bfloat16), a2_ref, b2_ref)     # /4   -> res2
    res2_ref[...] = y2.astype(res2_ref.dtype)
    y3 = stage(y2.astype(jnp.bfloat16), a3_ref, b3_ref)     # /8
    y4 = stage(y3.astype(jnp.bfloat16), a4_ref, b4_ref)     # /16  -> res4
    res4_ref[...] = y4.astype(res4_ref.dtype)


# ---------------------------------------------------------------------------
# One-time weight relayout: dense conv matrix per stage (done outside jit).
# flat_nhwc(x) @ A  ==  flat_nhwc(conv2d(x, w, stride=2, pad=1))
# ---------------------------------------------------------------------------
def _conv_matrix(w_oihw, bias, hin, win, *, stride=2, pad=1):
    w = np.asarray(w_oihw, np.float32)            # [O, I, KH, KW] (PyTorch OIHW)
    b = np.asarray(bias, np.float32)
    o_ch, i_ch, kh_dim, kw_dim = w.shape
    ho = (hin + 2 * pad - kh_dim) // stride + 1
    wo = (win + 2 * pad - kw_dim) // stride + 1
    A = np.zeros((hin, win, i_ch, ho, wo, o_ch), np.float32)
    for oh in range(ho):
        for ow in range(wo):
            for kh in range(kh_dim):
                ih = oh * stride + kh - pad
                if ih < 0 or ih >= hin:
                    continue
                for kw in range(kw_dim):
                    iw = ow * stride + kw - pad
                    if iw < 0 or iw >= win:
                        continue
                    A[ih, iw, :, oh, ow, :] += w[:, :, kh, kw].T   # [I, O]
    A = A.reshape(hin * win * i_ch, ho * wo * o_ch)
    b_rep = np.tile(b, ho * wo).reshape(1, ho * wo * o_ch)
    return (jnp.asarray(A, jnp.bfloat16),           # bf16 MXU operand
            jnp.asarray(b_rep, jnp.float32),        # f32 bias (per output col)
            (ho, wo, o_ch))


def make_backbone_params(key, c_in=4, widths=(8, 16, 32, 32)):
    params = {}
    cs = (c_in,) + tuple(widths)
    for i in range(len(widths)):
        key, kw, kb = jax.random.split(key, 3)
        fan_in = cs[i] * 3 * 3
        params[f"w{i+1}"] = (jax.random.normal(kw, (cs[i + 1], cs[i], 3, 3), jnp.float32)
                             * (2.0 / fan_in) ** 0.5)
        params[f"b{i+1}"] = jax.random.normal(kb, (cs[i + 1],), jnp.float32) * 0.01
    return params


def prepare_backbone(params, h, w):
    mats, meta = [], []
    hin, win = h, w
    for i in range(4):
        A, b_rep, (ho, wo, cout) = _conv_matrix(params[f"w{i+1}"], params[f"b{i+1}"],
                                                hin, win)
        mats += [A, b_rep]
        meta.append((ho, wo, cout))
        hin, win = ho, wo
    return tuple(mats), tuple(meta)


# ---------------------------------------------------------------------------
# backboneres.forward: both inputs batched together, one fused kernel call.
# ---------------------------------------------------------------------------
def make_backboneres_forward(prep_mats, meta, h, w, c_in, *, row_tile=512):
    h2, w2, c2 = meta[1]
    h4, w4, c4 = meta[3]
    n2 = h2 * w2 * c2
    n4 = h4 * w4 * c4
    k1 = h * w * c_in

    def fused_call(x_flat_bf16):
        m = x_flat_bf16.shape[0]
        tm = min(row_tile, m)                       # full extent when small
        grid = (pl.cdiv(m, tm),)

        def row_map(i):
            return (i, 0)

        def fixed_map(i):
            return (0, 0)

        in_specs = [pl.BlockSpec((tm, k1), row_map)]
        for s in range(4):
            a_mat = prep_mats[2 * s]
            b_vec = prep_mats[2 * s + 1]
            in_specs.append(pl.BlockSpec(a_mat.shape, fixed_map))
            in_specs.append(pl.BlockSpec(b_vec.shape, fixed_map))

        out_specs = (pl.BlockSpec((tm, n2), row_map),
                     pl.BlockSpec((tm, n4), row_map))

        return pl.pallas_call(
            _fused_backbone_kernel,
            out_shape=(jax.ShapeDtypeStruct((m, n2), jnp.float32),
                       jax.ShapeDtypeStruct((m, n4), jnp.float32)),
            grid=grid,
            in_specs=in_specs,
            out_specs=out_specs,
            compiler_params=pltpu.CompilerParams(
                dimension_semantics=("parallel",)),   # v7x: 2 TCs split rows
        )(x_flat_bf16, *prep_mats)

    @jax.jit
    def forward(x1, x2):
        b = x1.shape[0]
        x = jnp.concatenate([x1, x2], axis=0)                     # [2B, C, H, W]
        m = 2 * b
        # single NCHW -> NHWC relayout, flatten rows in (h, w, c) order
        x = jnp.transpose(x, (0, 2, 3, 1)).reshape(m, k1).astype(jnp.bfloat16)

        res2_flat, res4_flat = fused_call(x)

        def to_nchw(flat, hh, ww, cc):
            return flat.reshape(m, hh, ww, cc).transpose(0, 3, 1, 2)

        res2 = to_nchw(res2_flat, h2, w2, c2)
        res4 = to_nchw(res4_flat, h4, w4, c4)
        return {
            "x1_res2": res2[:b],
            "x2_res2": res2[b:],
            "x1_res4": res4[:b],
            "x2_res4": res4[b:],
        }

    return forward


# ---------------------------------------------------------------------------
# Pure-JAX reference (f32 convs) for a loose numerical sanity check.
# ---------------------------------------------------------------------------
def _reference_backbone(x_nchw, params):
    def conv_relu(x, w, b):
        y = jax.lax.conv_general_dilated(
            x, w, window_strides=(2, 2), padding=((1, 1), (1, 1)),
            dimension_numbers=("NCHW", "OIHW", "NCHW"))
        return jnp.maximum(y + b[None, :, None, None], 0.0)

    y1 = conv_relu(x_nchw, params["w1"], params["b1"])
    res2 = conv_relu(y1, params["w2"], params["b2"])
    y3 = conv_relu(res2, params["w3"], params["b3"])
    res4 = conv_relu(y3, params["w4"], params["b4"])
    return res2, res4


if __name__ == "__main__":
    key = jax.random.PRNGKey(0)
    kx1, kx2, kp = jax.random.split(key, 3)
    B, C, H, W = 2, 4, 16, 16
    x1 = jax.random.normal(kx1, (B, C, H, W), jnp.float32)   # NCHW
    x2 = jax.random.normal(kx2, (B, C, H, W), jnp.float32)
    params = make_backbone_params(kp, c_in=C)

    prep_mats, meta = prepare_backbone(params, H, W)
    forward = make_backboneres_forward(prep_mats, meta, H, W, C)

    out = forward(x1, x2)
    jax.block_until_ready(out)

    assert out["x1_res2"].shape == (B, 16, H // 4, W // 4)
    assert out["x2_res2"].shape == (B, 16, H // 4, W // 4)
    assert out["x1_res4"].shape == (B, 32, H // 16, W // 16)
    assert out["x2_res4"].shape == (B, 32, H // 16, W // 16)

    # Loose numerical check vs. f32 conv reference (kernel uses bf16 operands).
    ref2_1, ref4_1 = _reference_backbone(x1, params)
    ref2_2, ref4_2 = _reference_backbone(x2, params)
    np.testing.assert_allclose(np.asarray(out["x1_res2"]), np.asarray(ref2_1),
                               rtol=0.1, atol=0.1)
    np.testing.assert_allclose(np.asarray(out["x2_res2"]), np.asarray(ref2_2),
                               rtol=0.1, atol=0.1)
    np.testing.assert_allclose(np.asarray(out["x1_res4"]), np.asarray(ref4_1),
                               rtol=0.1, atol=0.1)
    np.testing.assert_allclose(np.asarray(out["x2_res4"]), np.asarray(ref4_2),
                               rtol=0.1, atol=0.1)

    print("KERNEL_OK")
</pallas_src>

<mosaic_0001>
module attributes {stable_mosaic.version = 11 : i64} {
  func.func @_fused_backbone_kernel(%arg0: i32, %arg1: memref<4x1024xbf16, #tpu.memory_space<vmem>>, %arg2: memref<1024x512xbf16, #tpu.memory_space<vmem>>, %arg3: memref<1x512xf32, #tpu.memory_space<vmem>>, %arg4: memref<512x256xbf16, #tpu.memory_space<vmem>>, %arg5: memref<1x256xf32, #tpu.memory_space<vmem>>, %arg6: memref<256x128xbf16, #tpu.memory_space<vmem>>, %arg7: memref<1x128xf32, #tpu.memory_space<vmem>>, %arg8: memref<128x32xbf16, #tpu.memory_space<vmem>>, %arg9: memref<1x32xf32, #tpu.memory_space<vmem>>, %arg10: memref<4x256xf32, #tpu.memory_space<vmem>>, %arg11: memref<4x32xf32, #tpu.memory_space<vmem>>) attributes {dimension_semantics = [#tpu.dimension_semantics<parallel>], iteration_bounds = array<i64: 1>, scalar_prefetch = 0 : i64, scratch_operands = 0 : i64, tpu.core_type = #tpu.core_type<tc>, window_params = [{transform_indices = @transform_0, window_bounds = array<i64: 4, 1024>}, {pipeline_mode = #tpu.pipeline_mode<synchronous>, transform_indices = @transform_1, window_bounds = array<i64: 1024, 512>}, {pipeline_mode = #tpu.pipeline_mode<synchronous>, transform_indices = @transform_2, window_bounds = array<i64: 1, 512>}, {pipeline_mode = #tpu.pipeline_mode<synchronous>, transform_indices = @transform_3, window_bounds = array<i64: 512, 256>}, {pipeline_mode = #tpu.pipeline_mode<synchronous>, transform_indices = @transform_4, window_bounds = array<i64: 1, 256>}, {pipeline_mode = #tpu.pipeline_mode<synchronous>, transform_indices = @transform_5, window_bounds = array<i64: 256, 128>}, {pipeline_mode = #tpu.pipeline_mode<synchronous>, transform_indices = @transform_6, window_bounds = array<i64: 1, 128>}, {pipeline_mode = #tpu.pipeline_mode<synchronous>, transform_indices = @transform_7, window_bounds = array<i64: 128, 32>}, {pipeline_mode = #tpu.pipeline_mode<synchronous>, transform_indices = @transform_8, window_bounds = array<i64: 1, 32>}, {transform_indices = @transform_9, window_bounds = array<i64: 4, 256>}, {transform_indices = @transform_10, window_bounds = array<i64: 4, 32>}]} {
    %c0 = arith.constant 0 : index
    %c0_0 = arith.constant 0 : index
    %0 = vector.load %arg1[%c0, %c0_0] : memref<4x1024xbf16, #tpu.memory_space<vmem>>, vector<4x1024xbf16>
    %c0_1 = arith.constant 0 : index
    %c0_2 = arith.constant 0 : index
    %1 = vector.load %arg2[%c0_1, %c0_2] : memref<1024x512xbf16, #tpu.memory_space<vmem>>, vector<1024x512xbf16>
    %cst = arith.constant dense<0.000000e+00> : vector<4x512xf32>
    %2 = tpu.matmul %0, %1, %cst {dimension_numbers = #tpu.dot_dimension_numbers<[1], [0], [0], [1], [0, 0, 1, 1], [], []>} : vector<4x1024xbf16>, vector<1024x512xbf16>, vector<4x512xf32> -> vector<4x512xf32>
    %c0_3 = arith.constant 0 : index
    %c0_4 = arith.constant 0 : index
    %3 = vector.load %arg3[%c0_3, %c0_4] : memref<1x512xf32, #tpu.memory_space<vmem>>, vector<1x512xf32>
    %4 = vector.broadcast %3 : vector<1x512xf32> to vector<4x512xf32>
    %5 = arith.addf %2, %4 : vector<4x512xf32>
    %cst_5 = arith.constant 0.000000e+00 : f32
    %6 = vector.broadcast %cst_5 : f32 to vector<4x512xf32>
    %7 = arith.maximumf %5, %6 : vector<4x512xf32>
    %8 = arith.truncf %7 : vector<4x512xf32> to vector<4x512xbf16>
    %c0_6 = arith.constant 0 : index
    %c0_7 = arith.constant 0 : index
    %9 = vector.load %arg4[%c0_6, %c0_7] : memref<512x256xbf16, #tpu.memory_space<vmem>>, vector<512x256xbf16>
    %cst_8 = arith.constant dense<0.000000e+00> : vector<4x256xf32>
    %10 = tpu.matmul %8, %9, %cst_8 {dimension_numbers = #tpu.dot_dimension_numbers<[1], [0], [0], [1], [0, 0, 1, 1], [], []>} : vector<4x512xbf16>, vector<512x256xbf16>, vector<4x256xf32> -> vector<4x256xf32>
    %c0_9 = arith.constant 0 : index
    %c0_10 = arith.constant 0 : index
    %11 = vector.load %arg5[%c0_9, %c0_10] : memref<1x256xf32, #tpu.memory_space<vmem>>, vector<1x256xf32>
    %12 = vector.broadcast %11 : vector<1x256xf32> to vector<4x256xf32>
    %13 = arith.addf %10, %12 : vector<4x256xf32>
    %cst_11 = arith.constant 0.000000e+00 : f32
    %14 = vector.broadcast %cst_11 : f32 to vector<4x256xf32>
    %15 = arith.maximumf %13, %14 : vector<4x256xf32>
    %c0_12 = arith.constant 0 : index
    %c0_13 = arith.constant 0 : index
    %16 = vector.load %arg10[%c0_12, %c0_13] : memref<4x256xf32, #tpu.memory_space<vmem>>, vector<4x256xf32>
    tpu.vector_store %arg10[%c0_12, %c0_13], %15 {strides = array<i32>} : memref<4x256xf32, #tpu.memory_space<vmem>>, vector<4x256xf32>,
    %17 = arith.truncf %15 : vector<4x256xf32> to vector<4x256xbf16>
    %c0_14 = arith.constant 0 : index
    %c0_15 = arith.constant 0 : index
    %18 = vector.load %arg6[%c0_14, %c0_15] : memref<256x128xbf16, #tpu.memory_space<vmem>>, vector<256x128xbf16>
    %cst_16 = arith.constant dense<0.000000e+00> : vector<4x128xf32>
    %19 = tpu.matmul %17, %18, %cst_16 {dimension_numbers = #tpu.dot_dimension_numbers<[1], [0], [0], [1], [0, 0, 1, 1], [], []>} : vector<4x256xbf16>, vector<256x128xbf16>, vector<4x128xf32> -> vector<4x128xf32>
    %c0_17 = arith.constant 0 : index
    %c0_18 = arith.constant 0 : index
    %20 = vector.load %arg7[%c0_17, %c0_18] : memref<1x128xf32, #tpu.memory_space<vmem>>, vector<1x128xf32>
    %21 = vector.broadcast %20 : vector<1x128xf32> to vector<4x128xf32>
    %22 = arith.addf %19, %21 : vector<4x128xf32>
    %cst_19 = arith.constant 0.000000e+00 : f32
    %23 = vector.broadcast %cst_19 : f32 to vector<4x128xf32>
    %24 = arith.maximumf %22, %23 : vector<4x128xf32>
    %25 = arith.truncf %24 : vector<4x128xf32> to vector<4x128xbf16>
    %c0_20 = arith.constant 0 : index
    %c0_21 = arith.constant 0 : index
    %26 = vector.load %arg8[%c0_20, %c0_21] : memref<128x32xbf16, #tpu.memory_space<vmem>>, vector<128x32xbf16>
    %cst_22 = arith.constant dense<0.000000e+00> : vector<4x32xf32>
    %27 = tpu.matmul %25, %26, %cst_22 {dimension_numbers = #tpu.dot_dimension_numbers<[1], [0], [0], [1], [0, 0, 1, 1], [], []>} : vector<4x128xbf16>, vector<128x32xbf16>, vector<4x32xf32> -> vector<4x32xf32>
    %c0_23 = arith.constant 0 : index
    %c0_24 = arith.constant 0 : index
    %28 = vector.load %arg9[%c0_23, %c0_24] : memref<1x32xf32, #tpu.memory_space<vmem>>, vector<1x32xf32>
    %29 = vector.broadcast %28 : vector<1x32xf32> to vector<4x32xf32>
    %30 = arith.addf %27, %29 : vector<4x32xf32>
    %cst_25 = arith.constant 0.000000e+00 : f32
    %31 = vector.broadcast %cst_25 : f32 to vector<4x32xf32>
    %32 = arith.maximumf %30, %31 : vector<4x32xf32>
    %c0_26 = arith.constant 0 : index
    %c0_27 = arith.constant 0 : index
    %33 = vector.load %arg11[%c0_26, %c0_27] : memref<4x32xf32, #tpu.memory_space<vmem>>, vector<4x32xf32>
    tpu.vector_store %arg11[%c0_26, %c0_27], %32 {strides = array<i32>} : memref<4x32xf32, #tpu.memory_space<vmem>>, vector<4x32xf32>,
    return
  }
  func.func @transform_0(%arg0: i32) -> (i32, i32) {
    %c0_i32 = arith.constant 0 : i32
    %c0_i32_0 = arith.constant 0 : i32
    return %arg0, %c0_i32 : i32, i32
  }
  func.func @transform_1(%arg0: i32) -> (i32, i32) {
    %c0_i32 = arith.constant 0 : i32
    %c0_i32_0 = arith.constant 0 : i32
    %c0_i32_1 = arith.constant 0 : i32
    return %c0_i32, %c0_i32_0 : i32, i32
  }
  func.func @transform_2(%arg0: i32) -> (i32, i32) {
    %c0_i32 = arith.constant 0 : i32
    %c0_i32_0 = arith.constant 0 : i32
    %c0_i32_1 = arith.constant 0 : i32
    return %c0_i32, %c0_i32_0 : i32, i32
  }
  func.func @transform_3(%arg0: i32) -> (i32, i32) {
    %c0_i32 = arith.constant 0 : i32
    %c0_i32_0 = arith.constant 0 : i32
    %c0_i32_1 = arith.constant 0 : i32
    return %c0_i32, %c0_i32_0 : i32, i32
  }
  func.func @transform_4(%arg0: i32) -> (i32, i32) {
    %c0_i32 = arith.constant 0 : i32
    %c0_i32_0 = arith.constant 0 : i32
    %c0_i32_1 = arith.constant 0 : i32
    return %c0_i32, %c0_i32_0 : i32, i32
  }
  func.func @transform_5(%arg0: i32) -> (i32, i32) {
    %c0_i32 = arith.constant 0 : i32
    %c0_i32_0 = arith.constant 0 : i32
    %c0_i32_1 = arith.constant 0 : i32
    return %c0_i32, %c0_i32_0 : i32, i32
  }
  func.func @transform_6(%arg0: i32) -> (i32, i32) {
    %c0_i32 = arith.constant 0 : i32
    %c0_i32_0 = arith.constant 0 : i32
    %c0_i32_1 = arith.constant 0 : i32
    return %c0_i32, %c0_i32_0 : i32, i32
  }
  func.func @transform_7(%arg0: i32) -> (i32, i32) {
    %c0_i32 = arith.constant 0 : i32
    %c0_i32_0 = arith.constant 0 : i32
    %c0_i32_1 = arith.constant 0 : i32
    return %c0_i32, %c0_i32_0 : i32, i32
  }
  func.func @transform_8(%arg0: i32) -> (i32, i32) {
    %c0_i32 = arith.constant 0 : i32
    %c0_i32_0 = arith.constant 0 : i32
    %c0_i32_1 = arith.constant 0 : i32
    return %c0_i32, %c0_i32_0 : i32, i32
  }
  func.func @transform_9(%arg0: i32) -> (i32, i32) {
    %c0_i32 = arith.constant 0 : i32
    %c0_i32_0 = arith.constant 0 : i32
    return %arg0, %c0_i32 : i32, i32
  }
  func.func @transform_10(%arg0: i32) -> (i32, i32) {
    %c0_i32 = arith.constant 0 : i32
    %c0_i32_0 = arith.constant 0 : i32
    return %arg0, %c0_i32 : i32, i32
  }
}

</mosaic_0001>

<bundles_post_ra>
// kernel: forward.1
= control target key start
LH: loop header
LB: loop body
LE: loop exit
PB: predicated region body
PF: predicated region fallthrough
CT: control target
= control target key end

     0   :  { %v295_v36 = vlaneseq  ;;  %v3701_v37 = vmov 1983009808   ;;  %vm3703_vm0 = vmmov 0   ;;  %vm2751_vm1 = vcmask 257024   ;;  %s4868_s1 = inlined_call_operand.vmem [shape: bf16[1024,512], index: 1, kind: input, shape index: {}]   ;;  %s4869_s0 = inlined_call_operand.vmem [shape: bf16[4,1024], index: 0, kind: input, shape index: {}]   ;;  %s4870_s3 = inlined_call_operand.vmem [shape: bf16[512,256], index: 3, kind: input, shape index: {}]   ;;  %s4871_s5 = inlined_call_operand.vmem [shape: bf16[256,128], index: 5, kind: input, shape index: {}]   ;;  %s4872_s2 = inlined_call_operand.vmem [shape: f32[1,512], index: 2, kind: input, shape index: {}]   ;;  %s4873_s7 = inlined_call_operand.vmem [shape: bf16[128,32], index: 7, kind: input, shape index: {}]   ;;  %s4874_s4 = inlined_call_operand.vmem [shape: f32[1,256], index: 4, kind: input, shape index: {}]   ;;  %s4875_s9 = inlined_call_operand.vmem [shape: f32[4,256], index: 9, kind: output, shape index: {0}]   ;;  %s4876_s6 = inlined_call_operand.vmem [shape: f32[1,128], index: 6, kind: input, shape index: {}]   ;;  %s4877_s8 = inlined_call_operand.vmem [shape: f32[1,32], index: 8, kind: input, shape index: {}]   ;;  %s4878_s10 = inlined_call_operand.vmem [shape: f32[4,32], index: 10, kind: output, shape index: {1}]  }
   0x1   :  { %v3195_v0 = vld [vmem:[%s4868_s1 + $0x4] ss:$16 sps:$4 sm:$0xff]   ;;  %v3197_v1 = vld [vmem:[%s4868_s1 + $0xc] ss:$16 sps:$4 sm:$0xff]   ;;  %v3199_v2 = vld [vmem:[%s4868_s1] ss:$16 sps:$4 sm:$0xff]   ;;  %v319_v38 = vunpack.c.l.s4 %v3701_v37 }
   0x2   :  { %1639 = vmatprep.subr.bf16.mxu0 %v3195_v0  ;;  %v3200_v3 = vld [vmem:[%s4868_s1 + $0x8] ss:$16 sps:$4 sm:$0xff]   ;;  %1803 = vmatprep.subr.bf16.mxu1 %v3197_v1  ;;  %v3201_v4 = vld [vmem:[%s4868_s1 + $0x24] ss:$16 sps:$4 sm:$0xff]   ;;  %v3203_v5 = vld [vmem:[%s4868_s1 + $0x2c] ss:$16 sps:$4 sm:$0xff]  }
   0x3   :  { %1640 = vmatpush1.bf16.msra.mxu0 %v3199_v2  ;;  %1804 = vmatpush1.bf16.msra.mxu1 %v3200_v3  ;;  %v3205_v6 = vld [vmem:[%s4868_s1 + $0x20] ss:$16 sps:$4 sm:$0xff]   ;;  %v3206_v7 = vld [vmem:[%s4868_s1 + $0x28] ss:$16 sps:$4 sm:$0xff]   ;;  %v3207_v8 = vld [vmem:[%s4868_s1 + $0x44] ss:$16 sps:$4 sm:$0xff]   ;;  %v320_v43 = vunpack.c.0.s8 %v319_v38 }
   0x4   :  { %1641 = vmatprep.subr.bf16.mxu0 %v3201_v4  ;;  %1805 = vmatprep.subr.bf16.mxu1 %v3203_v5  ;;  %v3209_v9 = vld [vmem:[%s4868_s1 + $0x4c] ss:$16 sps:$4 sm:$0xff]   ;;  %v3211_v10 = vld [vmem:[%s4868_s1 + $0x40] ss:$16 sps:$4 sm:$0xff]   ;;  %v3212_v11 = vld [vmem:[%s4868_s1 + $0x48] ss:$16 sps:$4 sm:$0xff]  }
   0x5   :  { %v3213_v12 = vld [vmem:[%s4868_s1 + $0x64] ss:$16 sps:$4 sm:$0xff]   ;;  %v3215_v13 = vld [vmem:[%s4868_s1 + $0x6c] ss:$16 sps:$4 sm:$0xff]   ;;  %v3217_v14 = vld [vmem:[%s4868_s1 + $0x60] ss:$16 sps:$4 sm:$0xff]  }
   0x6   :  { %v3218_v15 = vld [vmem:[%s4868_s1 + $0x68] ss:$16 sps:$4 sm:$0xff]   ;;  %v3219_v16 = vld [vmem:[%s4868_s1 + $0x84] ss:$16 sps:$4 sm:$0xff]   ;;  %v3221_v17 = vld [vmem:[%s4868_s1 + $0x8c] ss:$16 sps:$4 sm:$0xff]  }
   0x7   :  { %1642 = vmatpush1.bf16.msra.mxu0 %v3205_v6  ;;  %1806 = vmatpush1.bf16.msra.mxu1 %v3206_v7  ;;  %v3223_v18 = vld [vmem:[%s4868_s1 + $0x80] ss:$16 sps:$4 sm:$0xff]   ;;  %v3224_v19 = vld [vmem:[%s4868_s1 + $0x88] ss:$16 sps:$4 sm:$0xff]   ;;  %v3225_v20 = vld [vmem:[%s4868_s1 + $0xa4] ss:$16 sps:$4 sm:$0xff]  }
   0x8   :  { %1643 = vmatprep.subr.bf16.mxu0 %v3207_v8  ;;  %1807 = vmatprep.subr.bf16.mxu1 %v3209_v9  ;;  %v3227_v21 = vld [vmem:[%s4868_s1 + $0xac] ss:$16 sps:$4 sm:$0xff]   ;;  %v3229_v22 = vld [vmem:[%s4868_s1 + $0xa0] ss:$16 sps:$4 sm:$0xff]   ;;  %v3230_v23 = vld [vmem:[%s4868_s1 + $0xa8] ss:$16 sps:$4 sm:$0xff]  }
   0x9   :  { %v3231_v24 = vld [vmem:[%s4868_s1 + $0xc4] ss:$16 sps:$4 sm:$0xff]   ;;  %v3233_v25 = vld [vmem:[%s4868_s1 + $0xcc] ss:$16 sps:$4 sm:$0xff]   ;;  %v3235_v26 = vld [vmem:[%s4868_s1 + $0xc0] ss:$16 sps:$4 sm:$0xff]  }
   0xa   :  { %v3236_v27 = vld [vmem:[%s4868_s1 + $0xc8] ss:$16 sps:$4 sm:$0xff]   ;;  %v3237_v28 = vld [vmem:[%s4868_s1 + $0xe4] ss:$16 sps:$4 sm:$0xff]   ;;  %v3239_v29 = vld [vmem:[%s4868_s1 + $0xec] ss:$16 sps:$4 sm:$0xff]  }
   0xb   :  { %1644 = vmatpush1.bf16.msra.mxu0 %v3211_v10  ;;  %1808 = vmatpush1.bf16.msra.mxu1 %v3212_v11  ;;  %v3241_v30 = vld [vmem:[%s4868_s1 + $0xe0] ss:$16 sps:$4 sm:$0xff]   ;;  %v3242_v31 = vld [vmem:[%s4868_s1 + $0xe8] ss:$16 sps:$4 sm:$0xff]   ;;  %v3243_v32 = vld [vmem:[%s4868_s1 + $0x104] ss:$16 sps:$4 sm:$0xff]  }
   0xc   :  { %1645 = vmatprep.subr.bf16.mxu0 %v3213_v12  ;;  %1809 = vmatprep.subr.bf16.mxu1 %v3215_v13  ;;  %v3245_v33 = vld [vmem:[%s4868_s1 + $0x10c] ss:$16 sps:$4 sm:$0xff]   ;;  %v3247_v34 = vld [vmem:[%s4868_s1 + $0x100] ss:$16 sps:$4 sm:$0xff]   ;;  %v3248_v35 = vld [vmem:[%s4868_s1 + $0x108] ss:$16 sps:$4 sm:$0xff]  }
   0xd   :  { %v3249_v39 = vld [vmem:[%s4868_s1 + $0x124] ss:$16 sps:$4 sm:$0xff]   ;;  %v3251_v40 = vld [vmem:[%s4868_s1 + $0x12c] ss:$16 sps:$4 sm:$0xff]   ;;  %v3253_v41 = vld [vmem:[%s4868_s1 + $0x120] ss:$16 sps:$4 sm:$0xff]  }
   0xe   :  { %v3876_v42 = vshrl.u32 %v295_v36, 7  ;;  %v3254_v44 = vld [vmem:[%s4868_s1 + $0x128] ss:$16 sps:$4 sm:$0xff]   ;;  %v3255_v45 = vld [vmem:[%s4868_s1 + $0x144] ss:$16 sps:$4 sm:$0xff]  }
   0xf   :  { %1646 = vmatpush1.bf16.msra.mxu0 %v3217_v14  ;;  %1810 = vmatpush1.bf16.msra.mxu1 %v3218_v15  ;;  %v3257_v46 = vld [vmem:[%s4868_s1 + $0x14c] ss:$16 sps:$4 sm:$0xff]   ;;  %v3259_v47 = vld [vmem:[%s4868_s1 + $0x140] ss:$16 sps:$4 sm:$0xff]   ;;  %v3260_v48 = vld [vmem:[%s4868_s1 + $0x148] ss:$16 sps:$4 sm:$0xff]  }
  0x10   :  { %1647 = vmatprep.subr.bf16.mxu0 %v3219_v16  ;;  %1811 = vmatprep.subr.bf16.mxu1 %v3221_v17  ;;  %v3894_v49 = vsub.s32 %v320_v43, %v3876_v42  ;;  %v3261_v50 = vld [vmem:[%s4868_s1 + $0x164] ss:$16 sps:$4 sm:$0xff]   ;;  %v3263_v51 = vld [vmem:[%s4868_s1 + $0x16c] ss:$16 sps:$4 sm:$0xff]   ;;  %v3265_v54 = vld [vmem:[%s4868_s1 + $0x160] ss:$16 sps:$4 sm:$0xff]  }
  0x11   :  { %v35_v52 = vld [vmem:[%s4869_s0] sm:$0xff]  ;;  %v3266_v55 = vld [vmem:[%s4868_s1 + $0x168] ss:$16 sps:$4 sm:$0xff]   ;;  %v3269_v57 = vld [vmem:[%s4868_s1 + $0x18c] ss:$16 sps:$4 sm:$0xff]  }
  0x12   :  { %v324_v53 = vrot.slane %v35_v52, %v3894_v49  ;;  %v3267_v56 = vld [vmem:[%s4868_s1 + $0x184] ss:$16 sps:$4 sm:$0xff]   ;;  %v3271_v59 = vld [vmem:[%s4868_s1 + $0x180] ss:$16 sps:$4 sm:$0xff]   ;;  %v3272_v60 = vld [vmem:[%s4868_s1 + $0x188] ss:$16 sps:$4 sm:$0xff]   ;;  %v317_v7 = vcombine.high %v35_v52, %v35_v52 }
  0x13   :  { %1648 = vmatpush1.bf16.msra.mxu0 %v3223_v18  ;;  %1812 = vmatpush1.bf16.msra.mxu1 %v3224_v19  ;;  %v3273_v61 = vld [vmem:[%s4868_s1 + $0x1a4] ss:$16 sps:$4 sm:$0xff]   ;;  %v3275_v62 = vld [vmem:[%s4868_s1 + $0x1ac] ss:$16 sps:$4 sm:$0xff]   ;;  %v3277_v63 = vld [vmem:[%s4868_s1 + $0x1a0] ss:$16 sps:$4 sm:$0xff]  }
  0x14   :  { %1649 = vmatprep.subr.bf16.mxu0 %v3225_v20  ;;  %1813 = vmatprep.subr.bf16.mxu1 %v3227_v21  ;;  %v332_v58 = vcombine.high %v324_v53, %v324_v53  ;;  %v3278_v0 = vld [vmem:[%s4868_s1 + $0x1a8] ss:$16 sps:$4 sm:$0xff]   ;;  %v3279_v1 = vld [vmem:[%s4868_s1 + $0x1c4] ss:$16 sps:$4 sm:$0xff]   ;;  %v3281_v2 = vld [vmem:[%s4868_s1 + $0x1cc] ss:$16 sps:$4 sm:$0xff]   ;;  %v3967_v12 = vrot.slane %v317_v7, %v3894_v49 }
  0x15   :  { %v3283_v3 = vld [vmem:[%s4868_s1 + $0x1c0] ss:$16 sps:$4 sm:$0xff]   ;;  %v3284_v4 = vld [vmem:[%s4868_s1 + $0x1c8] ss:$16 sps:$4 sm:$0xff]   ;;  %v3285_v5 = vld [vmem:[%s4868_s1 + $0x1e4] ss:$16 sps:$4 sm:$0xff]  }
  0x16   :  { %1671 = vmatprep.mubr.bf16.mxu0 %v332_v58  ;;  %1835 = vmatprep.mubr.bf16.mxu1 %v332_v58  ;;  %v3287_v6 = vld [vmem:[%s4868_s1 + $0x1ec] ss:$16 sps:$4 sm:$0xff]   ;;  %v3289_v8 = vld [vmem:[%s4868_s1 + $0x1e0] ss:$16 sps:$4 sm:$0xff]   ;;  %v3290_v9 = vld [vmem:[%s4868_s1 + $0x1e8] ss:$16 sps:$4 sm:$0xff]   ;;  %v333_v17 = vcombine.high %v3967_v12, %v3967_v12 }
  0x17   :  { %1650 = vmatpush1.bf16.msra.mxu0 %v3229_v22  ;;  %1814 = vmatpush1.bf16.msra.mxu1 %v3230_v23  ;;  %v3295_v10 = vld [vmem:[%s4868_s1 + $0x204] ss:$16 sps:$4 sm:$0xff]   ;;  %v3298_v11 = vld [vmem:[%s4868_s1 + $0x20c] ss:$16 sps:$4 sm:$0xff]   ;;  %v3293_v13 = vld [vmem:[%s4868_s1 + $0x200] ss:$16 sps:$4 sm:$0xff]  }
  0x18   :  { %1651 = vmatprep.subr.bf16.mxu0 %v3231_v24  ;;  %1815 = vmatprep.subr.bf16.mxu1 %v3233_v25  ;;  %v3296_v14 = vld [vmem:[%s4868_s1 + $0x208] ss:$16 sps:$4 sm:$0xff]   ;;  %v3301_v15 = vld [vmem:[%s4868_s1 + $0x224] ss:$16 sps:$4 sm:$0xff]   ;;  %v3304_v16 = vld [vmem:[%s4868_s1 + $0x22c] ss:$16 sps:$4 sm:$0xff]  }
  0x19   :  { %v3299_v18 = vld [vmem:[%s4868_s1 + $0x220] ss:$16 sps:$4 sm:$0xff]   ;;  %v3302_v19 = vld [vmem:[%s4868_s1 + $0x228] ss:$16 sps:$4 sm:$0xff]   ;;  %v3307_v20 = vld [vmem:[%s4868_s1 + $0x244] ss:$16 sps:$4 sm:$0xff]  }
  0x1a   :  { %v3310_v21 = vld [vmem:[%s4868_s1 + $0x24c] ss:$16 sps:$4 sm:$0xff]   ;;  %v3305_v22 = vld [vmem:[%s4868_s1 + $0x240] ss:$16 sps:$4 sm:$0xff]   ;;  %v3308_v23 = vld [vmem:[%s4868_s1 + $0x248] ss:$16 sps:$4 sm:$0xff]  }
  0x1b   :  { %1652 = vmatpush1.bf16.msra.mxu0 %v3235_v26  ;;  %1816 = vmatpush1.bf16.msra.mxu1 %v3236_v27  ;;  %v3313_v24 = vld [vmem:[%s4868_s1 + $0x264] ss:$16 sps:$4 sm:$0xff]   ;;  %v3316_v25 = vld [vmem:[%s4868_s1 + $0x26c] ss:$16 sps:$4 sm:$0xff]   ;;  %v3311_v26 = vld [vmem:[%s4868_s1 + $0x260] ss:$16 sps:$4 sm:$0xff]  }
  0x1c   :  { %1653 = vmatprep.subr.bf16.mxu0 %v3237_v28  ;;  %1817 = vmatprep.subr.bf16.mxu1 %v3239_v29  ;;  %v3314_v27 = vld [vmem:[%s4868_s1 + $0x268] ss:$16 sps:$4 sm:$0xff]   ;;  %v3319_v28 = vld [vmem:[%s4868_s1 + $0x284] ss:$16 sps:$4 sm:$0xff]   ;;  %v3322_v29 = vld [vmem:[%s4868_s1 + $0x28c] ss:$16 sps:$4 sm:$0xff]  }
  0x1d   :  { %v3331_v36 = vld [vmem:[%s4868_s1 + $0x2c4] ss:$16 sps:$4 sm:$0xff]   ;;  %v3334_v37 = vld [vmem:[%s4868_s1 + $0x2cc] ss:$16 sps:$4 sm:$0xff]   ;;  %v3329_v38 = vld [vmem:[%s4868_s1 + $0x2c0] ss:$16 sps:$4 sm:$0xff]  }
  0x1e   :  { %v3335_v43 = vld [vmem:[%s4868_s1 + $0x2e0] ss:$16 sps:$4 sm:$0xff]   ;;  %v3361_v58 = vld [vmem:[%s4868_s1 + $0x364] ss:$16 sps:$4 sm:$0xff]   ;;  %v3382_v7 = vld [vmem:[%s4868_s1 + $0x3cc] ss:$16 sps:$4 sm:$0xff]  }
  0x1f   :  { %1654 = vmatpush1.bf16.msra.mxu0 %v3241_v30  ;;  %1818 = vmatpush1.bf16.msra.mxu1 %v3242_v31  ;;  %v3317_v30 = vld [vmem:[%s4868_s1 + $0x280] ss:$16 sps:$4 sm:$0xff]   ;;  %v3320_v31 = vld [vmem:[%s4868_s1 + $0x288] ss:$16 sps:$4 sm:$0xff]  }
  0x20   :  { %1655 = vmatprep.subr.bf16.mxu0 %v3243_v32  ;;  %1819 = vmatprep.subr.bf16.mxu1 %v3245_v33  ;;  %v3325_v32 = vld [vmem:[%s4868_s1 + $0x2a4] ss:$16 sps:$4 sm:$0xff]   ;;  %v3328_v33 = vld [vmem:[%s4868_s1 + $0x2ac] ss:$16 sps:$4 sm:$0xff]   ;;  %v3347_v52 = vld [vmem:[%s4868_s1 + $0x320] ss:$16 sps:$4 sm:$0xff]  }
  0x23   :  { %1656 = vmatpush1.bf16.msra.mxu0 %v3247_v34  ;;  %1820 = vmatpush1.bf16.msra.mxu1 %v3248_v35  ;;  %v3323_v34 = vld [vmem:[%s4868_s1 + $0x2a0] ss:$16 sps:$4 sm:$0xff]   ;;  %v3326_v35 = vld [vmem:[%s4868_s1 + $0x2a8] ss:$16 sps:$4 sm:$0xff]  }
  0x24   :  { %1657 = vmatprep.subr.bf16.mxu0 %v3249_v39  ;;  %1821 = vmatprep.subr.bf16.mxu1 %v3251_v40  ;;  %v3332_v39 = vld [vmem:[%s4868_s1 + $0x2c8] ss:$16 sps:$4 sm:$0xff]   ;;  %v3337_v40 = vld [vmem:[%s4868_s1 + $0x2e4] ss:$16 sps:$4 sm:$0xff]  }
  0x27   :  { %1658 = vmatpush1.bf16.msra.mxu0 %v3253_v41  ;;  %1822 = vmatpush1.bf16.msra.mxu1 %v3254_v44  ;;  %v3340_v41 = vld [vmem:[%s4868_s1 + $0x2ec] ss:$16 sps:$4 sm:$0xff]   ;;  %v3338_v44 = vld [vmem:[%s4868_s1 + $0x2e8] ss:$16 sps:$4 sm:$0xff]  }
  0x28   :  { %1659 = vmatprep.subr.bf16.mxu0 %v3255_v45  ;;  %1823 = vmatprep.subr.bf16.mxu1 %v3257_v46  ;;  %v3343_v45 = vld [vmem:[%s4868_s1 + $0x304] ss:$16 sps:$4 sm:$0xff]   ;;  %v3346_v46 = vld [vmem:[%s4868_s1 + $0x30c] ss:$16 sps:$4 sm:$0xff]  }
  0x2b   :  { %1660 = vmatpush1.bf16.msra.mxu0 %v3259_v47  ;;  %1824 = vmatpush1.bf16.msra.mxu1 %v3260_v48  ;;  %v3341_v47 = vld [vmem:[%s4868_s1 + $0x300] ss:$16 sps:$4 sm:$0xff]   ;;  %v3344_v48 = vld [vmem:[%s4868_s1 + $0x308] ss:$16 sps:$4 sm:$0xff]  }
  0x2c   :  { %1661 = vmatprep.subr.bf16.mxu0 %v3261_v50  ;;  %1825 = vmatprep.subr.bf16.mxu1 %v3263_v51  ;;  %v3349_v50 = vld [vmem:[%s4868_s1 + $0x324] ss:$16 sps:$4 sm:$0xff]   ;;  %v3352_v51 = vld [vmem:[%s4868_s1 + $0x32c] ss:$16 sps:$4 sm:$0xff]  }
  0x2f   :  { %1662 = vmatpush1.bf16.msra.mxu0 %v3265_v54  ;;  %1826 = vmatpush1.bf16.msra.mxu1 %v3266_v55  ;;  %v3355_v54 = vld [vmem:[%s4868_s1 + $0x344] ss:$16 sps:$4 sm:$0xff]   ;;  %v3358_v55 = vld [vmem:[%s4868_s1 + $0x34c] ss:$16 sps:$4 sm:$0xff]  }
  0x30   :  { %1663 = vmatprep.subr.bf16.mxu0 %v3267_v56  ;;  %1827 = vmatprep.subr.bf16.mxu1 %v3269_v57  ;;  %v3353_v56 = vld [vmem:[%s4868_s1 + $0x340] ss:$16 sps:$4 sm:$0xff]   ;;  %v3356_v57 = vld [vmem:[%s4868_s1 + $0x348] ss:$16 sps:$4 sm:$0xff]  }
  0x33   :  { %1664 = vmatpush1.bf16.msra.mxu0 %v3271_v59  ;;  %1828 = vmatpush1.bf16.msra.mxu1 %v3272_v60  ;;  %v3364_v59 = vld [vmem:[%s4868_s1 + $0x36c] ss:$16 sps:$4 sm:$0xff]   ;;  %v3359_v60 = vld [vmem:[%s4868_s1 + $0x360] ss:$16 sps:$4 sm:$0xff]  }
  0x34   :  { %1665 = vmatprep.subr.bf16.mxu0 %v3273_v61  ;;  %1829 = vmatprep.subr.bf16.mxu1 %v3275_v62  ;;  %v3362_v61 = vld [vmem:[%s4868_s1 + $0x368] ss:$16 sps:$4 sm:$0xff]   ;;  %v3367_v62 = vld [vmem:[%s4868_s1 + $0x384] ss:$16 sps:$4 sm:$0xff]  }
  0x37   :  { %1666 = vmatpush1.bf16.msra.mxu0 %v3277_v63  ;;  %1830 = vmatpush1.bf16.msra.mxu1 %v3278_v0  ;;  %v3370_v63 = vld [vmem:[%s4868_s1 + $0x38c] ss:$16 sps:$4 sm:$0xff]   ;;  %v3365_v0 = vld [vmem:[%s4868_s1 + $0x380] ss:$16 sps:$4 sm:$0xff]  }
  0x38   :  { %1667 = vmatprep.subr.bf16.mxu0 %v3279_v1  ;;  %1831 = vmatprep.subr.bf16.mxu1 %v3281_v2  ;;  %v3368_v1 = vld [vmem:[%s4868_s1 + $0x388] ss:$16 sps:$4 sm:$0xff]   ;;  %v3373_v2 = vld [vmem:[%s4868_s1 + $0x3a4] ss:$16 sps:$4 sm:$0xff]  }
  0x3b   :  { %1668 = vmatpush1.bf16.msra.mxu0 %v3283_v3  ;;  %1832 = vmatpush1.bf16.msra.mxu1 %v3284_v4  ;;  %v3376_v3 = vld [vmem:[%s4868_s1 + $0x3ac] ss:$16 sps:$4 sm:$0xff]   ;;  %v3371_v4 = vld [vmem:[%s4868_s1 + $0x3a0] ss:$16 sps:$4 sm:$0xff]  }
  0x3c   :  { %1669 = vmatprep.subr.bf16.mxu0 %v3285_v5  ;;  %1833 = vmatprep.subr.bf16.mxu1 %v3287_v6  ;;  %v3374_v5 = vld [vmem:[%s4868_s1 + $0x3a8] ss:$16 sps:$4 sm:$0xff]   ;;  %v3379_v6 = vld [vmem:[%s4868_s1 + $0x3c4] ss:$16 sps:$4 sm:$0xff]  }
  0x3f   :  { %1670 = vmatpush1.bf16.msra.mxu0 %v3289_v8  ;;  %1834 = vmatpush1.bf16.msra.mxu1 %v3290_v9  ;;  %v3377_v8 = vld [vmem:[%s4868_s1 + $0x3c0] ss:$16 sps:$4 sm:$0xff]   ;;  %v3380_v9 = vld [vmem:[%s4868_s1 + $0x3c8] ss:$16 sps:$4 sm:$0xff]  }
  0x40   :  { %1680 = vmatprep.subr.bf16.mxu0 %v3295_v10  ;;  %1844 = vmatprep.subr.bf16.mxu1 %v3298_v11  ;;  %v3385_v10 = vld [vmem:[%s4868_s1 + $0x3e4] ss:$16 sps:$4 sm:$0xff]   ;;  %v3388_v11 = vld [vmem:[%s4868_s1 + $0x3ec] ss:$16 sps:$4 sm:$0xff]  }
  0x42   :  { %1672 = vmatmul.mubr.bf16.vlgmr.msra.gmra.mrb[0].mxu0 %v324_v53  ;;  %1836 = vmatmul.mubr.bf16.vlgmr.msra.gmra.mrb[0].mxu1 %v324_v53  ;;  %v3350_v53 = vld [vmem:[%s4868_s1 + $0x328] ss:$16 sps:$4 sm:$0xff]  }
  0x43   :  { %1681 = vmatpush1.bf16.msra.mxu0 %v3293_v13  ;;  %1845 = vmatpush1.bf16.msra.mxu1 %v3296_v14  ;;  %v4154_v13 = vld [vmem:[%s4869_s0 + $0x8] sm:$0xff]  ;;  %v3383_v14 = vld [vmem:[%s4868_s1 + $0x3e0] ss:$16 sps:$4 sm:$0xff]  }
  0x44   :  { %1682 = vmatprep.subr.bf16.mxu0 %v3301_v15  ;;  %1846 = vmatprep.subr.bf16.mxu1 %v3304_v16  ;;  %v3386_v15 = vld [vmem:[%s4868_s1 + $0x3e8] ss:$16 sps:$4 sm:$0xff]   ;;  %v3391_v16 = vld [vmem:[%s4868_s1 + $0x404] ss:$16 sps:$4 sm:$0xff]  }
  0x45   :  { %1712 = vmatprep.mubr.bf16.mxu0 %v333_v17  ;;  %1876 = vmatprep.mubr.bf16.mxu1 %v333_v17  ;;  %v3394_v17 = vld [vmem:[%s4868_s1 + $0x40c] ss:$16 sps:$4 sm:$0xff]  }
  0x47   :  { %1683 = vmatpush1.bf16.msra.mxu0 %v3299_v18  ;;  %1847 = vmatpush1.bf16.msra.mxu1 %v3302_v19  ;;  %v4170_v18 = vrot.slane %v4154_v13, %v3894_v49  ;;  %v3389_v19 = vld [vmem:[%s4868_s1 + $0x400] ss:$16 sps:$4 sm:$0xff]  }
  0x48   :  { %1684 = vmatprep.subr.bf16.mxu0 %v3307_v20  ;;  %1848 = vmatprep.subr.bf16.mxu1 %v3310_v21  ;;  %v3392_v20 = vld [vmem:[%s4868_s1 + $0x408] ss:$16 sps:$4 sm:$0xff]   ;;  %v3397_v21 = vld [vmem:[%s4868_s1 + $0x424] ss:$16 sps:$4 sm:$0xff]  }
  0x4b   :  { %1685 = vmatpush1.bf16.msra.mxu0 %v3305_v22  ;;  %1849 = vmatpush1.bf16.msra.mxu1 %v3308_v23  ;;  %v3400_v22 = vld [vmem:[%s4868_s1 + $0x42c] ss:$16 sps:$4 sm:$0xff]   ;;  %v349_v23 = vcombine.high %v4170_v18, %v4170_v18 }
  0x4c   :  { %1686 = vmatprep.subr.bf16.mxu0 %v3313_v24  ;;  %1850 = vmatprep.subr.bf16.mxu1 %v3316_v25  ;;  %v3395_v24 = vld [vmem:[%s4868_s1 + $0x420] ss:$16 sps:$4 sm:$0xff]   ;;  %v3398_v25 = vld [vmem:[%s4868_s1 + $0x428] ss:$16 sps:$4 sm:$0xff]  }
  0x4f   :  { %1687 = vmatpush1.bf16.msra.mxu0 %v3311_v26  ;;  %1851 = vmatpush1.bf16.msra.mxu1 %v3314_v27  ;;  %v3403_v26 = vld [vmem:[%s4868_s1 + $0x444] ss:$16 sps:$4 sm:$0xff]   ;;  %v3401_v27 = vld [vmem:[%s4868_s1 + $0x440] ss:$16 sps:$4 sm:$0xff]  }
  0x50   :  { %1688 = vmatprep.subr.bf16.mxu0 %v3319_v28  ;;  %1852 = vmatprep.subr.bf16.mxu1 %v3322_v29  ;;  %v3404_v28 = vld [vmem:[%s4868_s1 + $0x448] ss:$16 sps:$4 sm:$0xff]   ;;  %v3409_v29 = vld [vmem:[%s4868_s1 + $0x464] ss:$16 sps:$4 sm:$0xff]  }
  0x53   :  { %1689 = vmatpush1.bf16.msra.mxu0 %v3317_v30  ;;  %1853 = vmatpush1.bf16.msra.mxu1 %v3320_v31  ;;  %v3412_v30 = vld [vmem:[%s4868_s1 + $0x46c] ss:$16 sps:$4 sm:$0xff]   ;;  %v3407_v31 = vld [vmem:[%s4868_s1 + $0x460] ss:$16 sps:$4 sm:$0xff]  }
  0x54   :  { %1690 = vmatprep.subr.bf16.mxu0 %v3325_v32  ;;  %1854 = vmatprep.subr.bf16.mxu1 %v3328_v33  ;;  %v3410_v32 = vld [vmem:[%s4868_s1 + $0x468] ss:$16 sps:$4 sm:$0xff]   ;;  %v3415_v33 = vld [vmem:[%s4868_s1 + $0x484] ss:$16 sps:$4 sm:$0xff]  }
  0x57   :  { %1691 = vmatpush1.bf16.msra.mxu0 %v3323_v34  ;;  %1855 = vmatpush1.bf16.msra.mxu1 %v3326_v35  ;;  %v3418_v34 = vld [vmem:[%s4868_s1 + $0x48c] ss:$16 sps:$4 sm:$0xff]   ;;  %v3413_v35 = vld [vmem:[%s4868_s1 + $0x480] ss:$16 sps:$4 sm:$0xff]  }
  0x58   :  { %1692 = vmatprep.subr.bf16.mxu0 %v3331_v36  ;;  %1856 = vmatprep.subr.bf16.mxu1 %v3334_v37  ;;  %v3416_v36 = vld [vmem:[%s4868_s1 + $0x488] ss:$16 sps:$4 sm:$0xff]   ;;  %v3421_v37 = vld [vmem:[%s4868_s1 + $0x4a4] ss:$16 sps:$4 sm:$0xff]  }
  0x5b   :  { %1693 = vmatpush1.bf16.msra.mxu0 %v3329_v38  ;;  %1857 = vmatpush1.bf16.msra.mxu1 %v3332_v39  ;;  %v3424_v38 = vld [vmem:[%s4868_s1 + $0x4ac] ss:$16 sps:$4 sm:$0xff]   ;;  %v3419_v39 = vld [vmem:[%s4868_s1 + $0x4a0] ss:$16 sps:$4 sm:$0xff]  }
  0x5c   :  { %1694 = vmatprep.subr.bf16.mxu0 %v3337_v40  ;;  %1858 = vmatprep.subr.bf16.mxu1 %v3340_v41  ;;  %v3422_v40 = vld [vmem:[%s4868_s1 + $0x4a8] ss:$16 sps:$4 sm:$0xff]   ;;  %v3427_v41 = vld [vmem:[%s4868_s1 + $0x4c4] ss:$16 sps:$4 sm:$0xff]  }
  0x5f   :  { %1695 = vmatpush1.bf16.msra.mxu0 %v3335_v43  ;;  %1859 = vmatpush1.bf16.msra.mxu1 %v3338_v44  ;;  %v3430_v43 = vld [vmem:[%s4868_s1 + $0x4cc] ss:$16 sps:$4 sm:$0xff]   ;;  %v3425_v44 = vld [vmem:[%s4868_s1 + $0x4c0] ss:$16 sps:$4 sm:$0xff]  }
  0x60   :  { %1696 = vmatprep.subr.bf16.mxu0 %v3343_v45  ;;  %1860 = vmatprep.subr.bf16.mxu1 %v3346_v46  ;;  %v3428_v45 = vld [vmem:[%s4868_s1 + $0x4c8] ss:$16 sps:$4 sm:$0xff]   ;;  %v3433_v46 = vld [vmem:[%s4868_s1 + $0x4e4] ss:$16 sps:$4 sm:$0xff]  }
  0x63   :  { %1697 = vmatpush1.bf16.msra.mxu0 %v3341_v47  ;;  %1861 = vmatpush1.bf16.msra.mxu1 %v3344_v48  ;;  %v3436_v47 = vld [vmem:[%s4868_s1 + $0x4ec] ss:$16 sps:$4 sm:$0xff]   ;;  %v3431_v48 = vld [vmem:[%s4868_s1 + $0x4e0] ss:$16 sps:$4 sm:$0xff]  }
  0x64   :  { %1698 = vmatprep.subr.bf16.mxu0 %v3349_v50  ;;  %1862 = vmatprep.subr.bf16.mxu1 %v3352_v51  ;;  %v3434_v50 = vld [vmem:[%s4868_s1 + $0x4e8] ss:$16 sps:$4 sm:$0xff]   ;;  %v3439_v51 = vld [vmem:[%s4868_s1 + $0x504] ss:$16 sps:$4 sm:$0xff]  }
  0x67   :  { %1699 = vmatpush1.bf16.msra.mxu0 %v3347_v52  ;;  %1863 = vmatpush1.bf16.msra.mxu1 %v3350_v53  ;;  %v3442_v52 = vld [vmem:[%s4868_s1 + $0x50c] ss:$16 sps:$4 sm:$0xff]   ;;  %v3437_v53 = vld [vmem:[%s4868_s1 + $0x500] ss:$16 sps:$4 sm:$0xff]  }
  0x68   :  { %1700 = vmatprep.subr.bf16.mxu0 %v3355_v54  ;;  %1864 = vmatprep.subr.bf16.mxu1 %v3358_v55  ;;  %v3440_v54 = vld [vmem:[%s4868_s1 + $0x508] ss:$16 sps:$4 sm:$0xff]   ;;  %v3445_v55 = vld [vmem:[%s4868_s1 + $0x524] ss:$16 sps:$4 sm:$0xff]  }
  0x6b   :  { %1701 = vmatpush1.bf16.msra.mxu0 %v3353_v56  ;;  %1865 = vmatpush1.bf16.msra.mxu1 %v3356_v57  ;;  %v3448_v56 = vld [vmem:[%s4868_s1 + $0x52c] ss:$16 sps:$4 sm:$0xff]   ;;  %v3443_v57 = vld [vmem:[%s4868_s1 + $0x520] ss:$16 sps:$4 sm:$0xff]  }
  0x6c   :  { %1702 = vmatprep.subr.bf16.mxu0 %v3361_v58  ;;  %1866 = vmatprep.subr.bf16.mxu1 %v3364_v59  ;;  %v3446_v58 = vld [vmem:[%s4868_s1 + $0x528] ss:$16 sps:$4 sm:$0xff]   ;;  %v3451_v59 = vld [vmem:[%s4868_s1 + $0x544] ss:$16 sps:$4 sm:$0xff]  }
  0x6f   :  { %1703 = vmatpush1.bf16.msra.mxu0 %v3359_v60  ;;  %1867 = vmatpush1.bf16.msra.mxu1 %v3362_v61  ;;  %v3454_v60 = vld [vmem:[%s4868_s1 + $0x54c] ss:$16 sps:$4 sm:$0xff]   ;;  %v3449_v61 = vld [vmem:[%s4868_s1 + $0x540] ss:$16 sps:$4 sm:$0xff]  }
  0x70   :  { %1704 = vmatprep.subr.bf16.mxu0 %v3367_v62  ;;  %1868 = vmatprep.subr.bf16.mxu1 %v3370_v63  ;;  %v3452_v62 = vld [vmem:[%s4868_s1 + $0x548] ss:$16 sps:$4 sm:$0xff]   ;;  %v3457_v63 = vld [vmem:[%s4868_s1 + $0x564] ss:$16 sps:$4 sm:$0xff]  }
  0x73   :  { %1705 = vmatpush1.bf16.msra.mxu0 %v3365_v0  ;;  %1869 = vmatpush1.bf16.msra.mxu1 %v3368_v1  ;;  %v3460_v0 = vld [vmem:[%s4868_s1 + $0x56c] ss:$16 sps:$4 sm:$0xff]   ;;  %v3455_v1 = vld [vmem:[%s4868_s1 + $0x560] ss:$16 sps:$4 sm:$0xff]  }
  0x74   :  { %1706 = vmatprep.subr.bf16.mxu0 %v3373_v2  ;;  %1870 = vmatprep.subr.bf16.mxu1 %v3376_v3  ;;  %v3458_v2 = vld [vmem:[%s4868_s1 + $0x568] ss:$16 sps:$4 sm:$0xff]   ;;  %v3463_v3 = vld [vmem:[%s4868_s1 + $0x584] ss:$16 sps:$4 sm:$0xff]  }
  0x77   :  { %1707 = vmatpush1.bf16.msra.mxu0 %v3371_v4  ;;  %1871 = vmatpush1.bf16.msra.mxu1 %v3374_v5  ;;  %v3466_v4 = vld [vmem:[%s4868_s1 + $0x58c] ss:$16 sps:$4 sm:$0xff]   ;;  %v3461_v5 = vld [vmem:[%s4868_s1 + $0x580] ss:$16 sps:$4 sm:$0xff]  }
  0x78   :  { %1708 = vmatprep.subr.bf16.mxu0 %v3379_v6  ;;  %1872 = vmatprep.subr.bf16.mxu1 %v3382_v7  ;;  %v3464_v6 = vld [vmem:[%s4868_s1 + $0x588] ss:$16 sps:$4 sm:$0xff]   ;;  %v3469_v7 = vld [vmem:[%s4868_s1 + $0x5a4] ss:$16 sps:$4 sm:$0xff]  }
  0x7b   :  { %1709 = vmatpush1.bf16.msra.mxu0 %v3377_v8  ;;  %1873 = vmatpush1.bf16.msra.mxu1 %v3380_v9  ;;  %v3472_v8 = vld [vmem:[%s4868_s1 + $0x5ac] ss:$16 sps:$4 sm:$0xff]   ;;  %v3467_v9 = vld [vmem:[%s4868_s1 + $0x5a0] ss:$16 sps:$4 sm:$0xff]  }
  0x7c   :  { %1710 = vmatprep.subr.bf16.mxu0 %v3385_v10  ;;  %1874 = vmatprep.subr.bf16.mxu1 %v3388_v11  ;;  %v3470_v10 = vld [vmem:[%s4868_s1 + $0x5a8] ss:$16 sps:$4 sm:$0xff]   ;;  %v3475_v11 = vld [vmem:[%s4868_s1 + $0x5c4] ss:$16 sps:$4 sm:$0xff]  }
  0x7f   :  { %1711 = vmatpush1.bf16.msra.mxu0 %v3383_v14  ;;  %1875 = vmatpush1.bf16.msra.mxu1 %v3386_v15  ;;  %v3478_v14 = vld [vmem:[%s4868_s1 + $0x5cc] ss:$16 sps:$4 sm:$0xff]   ;;  %v3473_v15 = vld [vmem:[%s4868_s1 + $0x5c0] ss:$16 sps:$4 sm:$0xff]  }
  0x80   :  { %1721 = vmatprep.subr.bf16.mxu0 %v3391_v16  ;;  %1885 = vmatprep.subr.bf16.mxu1 %v3394_v17  ;;  %v3476_v16 = vld [vmem:[%s4868_s1 + $0x5c8] ss:$16 sps:$4 sm:$0xff]   ;;  %v3481_v17 = vld [vmem:[%s4868_s1 + $0x5e4] ss:$16 sps:$4 sm:$0xff]  }
  0x82   :  { %1713 = vmatmul.mubr.bf16.vlgmr.msra.gmra.mrb[0].mxu0 %v3967_v12  ;;  %1877 = vmatmul.mubr.bf16.vlgmr.msra.gmra.mrb[0].mxu1 %v3967_v12  ;;  %v3406_v12 = vld [vmem:[%s4868_s1 + $0x44c] ss:$16 sps:$4 sm:$0xff]  }
  0x83   :  { %1722 = vmatpush1.bf16.msra.mxu0 %v3389_v19  ;;  %1886 = vmatpush1.bf16.msra.mxu1 %v3392_v20  ;;  %v3484_v19 = vld [vmem:[%s4868_s1 + $0x5ec] ss:$16 sps:$4 sm:$0xff]   ;;  %v334_v20 = vcombine.high %v4154_v13, %v4154_v13 }
  0x84   :  { %1723 = vmatprep.subr.bf16.mxu0 %v3397_v21  ;;  %1887 = vmatprep.subr.bf16.mxu1 %v3400_v22  ;;  %v3479_v21 = vld [vmem:[%s4868_s1 + $0x5e0] ss:$16 sps:$4 sm:$0xff]   ;;  %v3482_v22 = vld [vmem:[%s4868_s1 + $0x5e8] ss:$16 sps:$4 sm:$0xff]   ;;  %v3490_v13 = vld [vmem:[%s4868_s1 + $0x60c] ss:$16 sps:$4 sm:$0xff]  }
  0x85   :  { %1753 = vmatprep.mubr.bf16.mxu0 %v349_v23  ;;  %1917 = vmatprep.mubr.bf16.mxu1 %v349_v23  ;;  %v3487_v23 = vld [vmem:[%s4868_s1 + $0x604] ss:$16 sps:$4 sm:$0xff]  }
  0x87   :  { %1724 = vmatpush1.bf16.msra.mxu0 %v3395_v24  ;;  %1888 = vmatpush1.bf16.msra.mxu1 %v3398_v25  ;;  %v3485_v24 = vld [vmem:[%s4868_s1 + $0x600] ss:$16 sps:$4 sm:$0xff]   ;;  %v3488_v25 = vld [vmem:[%s4868_s1 + $0x608] ss:$16 sps:$4 sm:$0xff]  }
  0x88   :  { %1725 = vmatprep.subr.bf16.mxu0 %v3403_v26  ;;  %1889 = vmatprep.subr.bf16.mxu1 %v3406_v12  ;;  %v4377_v26 = vrot.slane %v334_v20, %v3894_v49  ;;  %v3493_v12 = vld [vmem:[%s4868_s1 + $0x624] ss:$16 sps:$4 sm:$0xff]   ;;  %v3494_v49 = vld [vmem:[%s4868_s1 + $0x628] ss:$16 sps:$4 sm:$0xff]   ;;  %v3569_v20 = vld [vmem:[%s4868_s1 + $0x7c0] ss:$16 sps:$4 sm:$0xff]  }
  0x8b   :  { %1726 = vmatpush1.bf16.msra.mxu0 %v3401_v27  ;;  %1890 = vmatpush1.bf16.msra.mxu1 %v3404_v28  ;;  %v3496_v27 = vld [vmem:[%s4868_s1 + $0x62c] ss:$16 sps:$4 sm:$0xff]   ;;  %v3491_v28 = vld [vmem:[%s4868_s1 + $0x620] ss:$16 sps:$4 sm:$0xff]  }
  0x8c   :  { %1727 = vmatprep.subr.bf16.mxu0 %v3409_v29  ;;  %1891 = vmatprep.subr.bf16.mxu1 %v3412_v30  ;;  %v350_v29 = vcombine.high %v4377_v26, %v4377_v26  ;;  %v3499_v30 = vld [vmem:[%s4868_s1 + $0x644] ss:$16 sps:$4 sm:$0xff]  }
  0x8f   :  { %1728 = vmatpush1.bf16.msra.mxu0 %v3407_v31  ;;  %1892 = vmatpush1.bf16.msra.mxu1 %v3410_v32  ;;  %v3502_v31 = vld [vmem:[%s4868_s1 + $0x64c] ss:$16 sps:$4 sm:$0xff]   ;;  %v3497_v32 = vld [vmem:[%s4868_s1 + $0x640] ss:$16 sps:$4 sm:$0xff]  }
  0x90   :  { %1729 = vmatprep.subr.bf16.mxu0 %v3415_v33  ;;  %1893 = vmatprep.subr.bf16.mxu1 %v3418_v34  ;;  %v3505_v33 = vld [vmem:[%s4868_s1 + $0x664] ss:$16 sps:$4 sm:$0xff]   ;;  %v3508_v34 = vld [vmem:[%s4868_s1 + $0x66c] ss:$16 sps:$4 sm:$0xff]  }
  0x93   :  { %1730 = vmatpush1.bf16.msra.mxu0 %v3413_v35  ;;  %1894 = vmatpush1.bf16.msra.mxu1 %v3416_v36  ;;  %v3503_v35 = vld [vmem:[%s4868_s1 + $0x660] ss:$16 sps:$4 sm:$0xff]   ;;  %v3506_v36 = vld [vmem:[%s4868_s1 + $0x668] ss:$16 sps:$4 sm:$0xff]  }
  0x94   :  { %1731 = vmatprep.subr.bf16.mxu0 %v3421_v37  ;;  %1895 = vmatprep.subr.bf16.mxu1 %v3424_v38  ;;  %v3511_v37 = vld [vmem:[%s4868_s1 + $0x684] ss:$16 sps:$4 sm:$0xff]   ;;  %v3514_v38 = vld [vmem:[%s4868_s1 + $0x68c] ss:$16 sps:$4 sm:$0xff]  }
  0x97   :  { %1732 = vmatpush1.bf16.msra.mxu0 %v3419_v39  ;;  %1896 = vmatpush1.bf16.msra.mxu1 %v3422_v40  ;;  %v3509_v39 = vld [vmem:[%s4868_s1 + $0x680] ss:$16 sps:$4 sm:$0xff]   ;;  %v3512_v40 = vld [vmem:[%s4868_s1 + $0x688] ss:$16 sps:$4 sm:$0xff]  }
  0x98   :  { %1733 = vmatprep.subr.bf16.mxu0 %v3427_v41  ;;  %1897 = vmatprep.subr.bf16.mxu1 %v3430_v43  ;;  %v3517_v41 = vld [vmem:[%s4868_s1 + $0x6a4] ss:$16 sps:$4 sm:$0xff]   ;;  %v3520_v43 = vld [vmem:[%s4868_s1 + $0x6ac] ss:$16 sps:$4 sm:$0xff]  }
  0x9b   :  { %1734 = vmatpush1.bf16.msra.mxu0 %v3425_v44  ;;  %1898 = vmatpush1.bf16.msra.mxu1 %v3428_v45  ;;  %v3515_v44 = vld [vmem:[%s4868_s1 + $0x6a0] ss:$16 sps:$4 sm:$0xff]   ;;  %v3518_v45 = vld [vmem:[%s4868_s1 + $0x6a8] ss:$16 sps:$4 sm:$0xff]  }
  0x9c   :  { %1735 = vmatprep.subr.bf16.mxu0 %v3433_v46  ;;  %1899 = vmatprep.subr.bf16.mxu1 %v3436_v47  ;;  %v3523_v46 = vld [vmem:[%s4868_s1 + $0x6c4] ss:$16 sps:$4 sm:$0xff]   ;;  %v3526_v47 = vld [vmem:[%s4868_s1 + $0x6cc] ss:$16 sps:$4 sm:$0xff]  }
  0x9f   :  { %1736 = vmatpush1.bf16.msra.mxu0 %v3431_v48  ;;  %1900 = vmatpush1.bf16.msra.mxu1 %v3434_v50  ;;  %v3521_v48 = vld [vmem:[%s4868_s1 + $0x6c0] ss:$16 sps:$4 sm:$0xff]   ;;  %v3524_v50 = vld [vmem:[%s4868_s1 + $0x6c8] ss:$16 sps:$4 sm:$0xff]  }
  0xa0   :  { %1737 = vmatprep.subr.bf16.mxu0 %v3439_v51  ;;  %1901 = vmatprep.subr.bf16.mxu1 %v3442_v52  ;;  %v3529_v51 = vld [vmem:[%s4868_s1 + $0x6e4] ss:$16 sps:$4 sm:$0xff]   ;;  %v3532_v52 = vld [vmem:[%s4868_s1 + $0x6ec] ss:$16 sps:$4 sm:$0xff]  }
  0xa3   :  { %1738 = vmatpush1.bf16.msra.mxu0 %v3437_v53  ;;  %1902 = vmatpush1.bf16.msra.mxu1 %v3440_v54  ;;  %v3527_v53 = vld [vmem:[%s4868_s1 + $0x6e0] ss:$16 sps:$4 sm:$0xff]   ;;  %v3530_v54 = vld [vmem:[%s4868_s1 + $0x6e8] ss:$16 sps:$4 sm:$0xff]  }
  0xa4   :  { %1739 = vmatprep.subr.bf16.mxu0 %v3445_v55  ;;  %1903 = vmatprep.subr.bf16.mxu1 %v3448_v56  ;;  %v3535_v55 = vld [vmem:[%s4868_s1 + $0x704] ss:$16 sps:$4 sm:$0xff]   ;;  %v3538_v56 = vld [vmem:[%s4868_s1 + $0x70c] ss:$16 sps:$4 sm:$0xff]  }
  0xa7   :  { %1740 = vmatpush1.bf16.msra.mxu0 %v3443_v57  ;;  %1904 = vmatpush1.bf16.msra.mxu1 %v3446_v58  ;;  %v3533_v57 = vld [vmem:[%s4868_s1 + $0x700] ss:$16 sps:$4 sm:$0xff]   ;;  %v3536_v58 = vld [vmem:[%s4868_s1 + $0x708] ss:$16 sps:$4 sm:$0xff]  }
  0xa8   :  { %1741 = vmatprep.subr.bf16.mxu0 %v3451_v59  ;;  %1905 = vmatprep.subr.bf16.mxu1 %v3454_v60  ;;  %v3541_v59 = vld [vmem:[%s4868_s1 + $0x724] ss:$16 sps:$4 sm:$0xff]   ;;  %v3544_v60 = vld [vmem:[%s4868_s1 + $0x72c] ss:$16 sps:$4 sm:$0xff]  }
  0xab   :  { %1742 = vmatpush1.bf16.msra.mxu0 %v3449_v61  ;;  %1906 = vmatpush1.bf16.msra.mxu1 %v3452_v62  ;;  %v3539_v61 = vld [vmem:[%s4868_s1 + $0x720] ss:$16 sps:$4 sm:$0xff]   ;;  %v3542_v62 = vld [vmem:[%s4868_s1 + $0x728] ss:$16 sps:$4 sm:$0xff]  }
  0xac   :  { %1743 = vmatprep.subr.bf16.mxu0 %v3457_v63  ;;  %1907 = vmatprep.subr.bf16.mxu1 %v3460_v0  ;;  %v3547_v63 = vld [vmem:[%s4868_s1 + $0x744] ss:$16 sps:$4 sm:$0xff]   ;;  %v3550_v0 = vld [vmem:[%s4868_s1 + $0x74c] ss:$16 sps:$4 sm:$0xff]  }
  0xaf   :  { %1744 = vmatpush1.bf16.msra.mxu0 %v3455_v1  ;;  %1908 = vmatpush1.bf16.msra.mxu1 %v3458_v2  ;;  %v3545_v1 = vld [vmem:[%s4868_s1 + $0x740] ss:$16 sps:$4 sm:$0xff]   ;;  %v3548_v2 = vld [vmem:[%s4868_s1 + $0x748] ss:$16 sps:$4 sm:$0xff]  }
  0xb0   :  { %1745 = vmatprep.subr.bf16.mxu0 %v3463_v3  ;;  %1909 = vmatprep.subr.bf16.mxu1 %v3466_v4  ;;  %v3553_v3 = vld [vmem:[%s4868_s1 + $0x764] ss:$16 sps:$4 sm:$0xff]   ;;  %v3556_v4 = vld [vmem:[%s4868_s1 + $0x76c] ss:$16 sps:$4 sm:$0xff]  }
  0xb3   :  { %1746 = vmatpush1.bf16.msra.mxu0 %v3461_v5  ;;  %1910 = vmatpush1.bf16.msra.mxu1 %v3464_v6  ;;  %v3551_v5 = vld [vmem:[%s4868_s1 + $0x760] ss:$16 sps:$4 sm:$0xff]   ;;  %v3554_v6 = vld [vmem:[%s4868_s1 + $0x768] ss:$16 sps:$4 sm:$0xff]  }
  0xb4   :  { %1747 = vmatprep.subr.bf16.mxu0 %v3469_v7  ;;  %1911 = vmatprep.subr.bf16.mxu1 %v3472_v8  ;;  %v3559_v7 = vld [vmem:[%s4868_s1 + $0x784] ss:$16 sps:$4 sm:$0xff]   ;;  %v3562_v8 = vld [vmem:[%s4868_s1 + $0x78c] ss:$16 sps:$4 sm:$0xff]  }
  0xb7   :  { %1748 = vmatpush1.bf16.msra.mxu0 %v3467_v9  ;;  %1912 = vmatpush1.bf16.msra.mxu1 %v3470_v10  ;;  %v3557_v9 = vld [vmem:[%s4868_s1 + $0x780] ss:$16 sps:$4 sm:$0xff]   ;;  %v3560_v10 = vld [vmem:[%s4868_s1 + $0x788] ss:$16 sps:$4 sm:$0xff]  }
  0xb8   :  { %1749 = vmatprep.subr.bf16.mxu0 %v3475_v11  ;;  %1913 = vmatprep.subr.bf16.mxu1 %v3478_v14  ;;  %v3565_v11 = vld [vmem:[%s4868_s1 + $0x7a4] ss:$16 sps:$4 sm:$0xff]   ;;  %v3568_v14 = vld [vmem:[%s4868_s1 + $0x7ac] ss:$16 sps:$4 sm:$0xff]  }
  0xbb   :  { %1750 = vmatpush1.bf16.msra.mxu0 %v3473_v15  ;;  %1914 = vmatpush1.bf16.msra.mxu1 %v3476_v16  ;;  %v3563_v15 = vld [vmem:[%s4868_s1 + $0x7a0] ss:$16 sps:$4 sm:$0xff]   ;;  %v3566_v16 = vld [vmem:[%s4868_s1 + $0x7a8] ss:$16 sps:$4 sm:$0xff]  }
  0xbc   :  { %1751 = vmatprep.subr.bf16.mxu0 %v3481_v17  ;;  %1915 = vmatprep.subr.bf16.mxu1 %v3484_v19  ;;  %v3571_v17 = vld [vmem:[%s4868_s1 + $0x7c4] ss:$16 sps:$4 sm:$0xff]   ;;  %v3574_v19 = vld [vmem:[%s4868_s1 + $0x7cc] ss:$16 sps:$4 sm:$0xff]  }
  0xbf   :  { %1752 = vmatpush1.bf16.msra.mxu0 %v3479_v21  ;;  %1916 = vmatpush1.bf16.msra.mxu1 %v3482_v22  ;;  %v3572_v21 = vld [vmem:[%s4868_s1 + $0x7c8] ss:$16 sps:$4 sm:$0xff]   ;;  %v3577_v22 = vld [vmem:[%s4868_s1 + $0x7e4] ss:$16 sps:$4 sm:$0xff]  }
  0xc0   :  { %1762 = vmatprep.subr.bf16.mxu0 %v3487_v23  ;;  %1926 = vmatprep.subr.bf16.mxu1 %v3490_v13  ;;  %v3580_v23 = vld [vmem:[%s4868_s1 + $0x7ec] ss:$16 sps:$4 sm:$0xff]   ;;  %v3575_v13 = vld [vmem:[%s4868_s1 + $0x7e0] ss:$16 sps:$4 sm:$0xff]  }
  0xc2   :  { %1754 = vmatmul.mubr.bf16.vlgmr.msra.gmra.mrb[0].mxu0 %v4170_v18  ;;  %1918 = vmatmul.mubr.bf16.vlgmr.msra.gmra.mrb[0].mxu1 %v4170_v18  ;;  %v3500_v18 = vld [vmem:[%s4868_s1 + $0x648] ss:$16 sps:$4 sm:$0xff]  }
  0xc3   :  { %1763 = vmatpush1.bf16.msra.mxu0 %v3485_v24  ;;  %1927 = vmatpush1.bf16.msra.mxu1 %v3488_v25  ;;  %v3578_v24 = vld [vmem:[%s4868_s1 + $0x7e8] ss:$16 sps:$4 sm:$0xff]   ;;  %v3583_v25 = vld [vmem:[%s4870_s3 + $0x4] ss:$8 sps:$4 sm:$0xff]  }
  0xc4   :  { %1764 = vmatprep.subr.bf16.mxu0 %v3493_v12  ;;  %1928 = vmatprep.subr.bf16.mxu1 %v3496_v27  ;;  %v3581_v12 = vld [vmem:[%s4870_s3] ss:$8 sps:$4 sm:$0xff]   ;;  %v3586_v27 = vld [vmem:[%s4870_s3 + $0x14] ss:$8 sps:$4 sm:$0xff]  }
  0xc5   :  { %1794 = vmatprep.mubr.bf16.mxu0 %v350_v29  ;;  %1958 = vmatprep.mubr.bf16.mxu1 %v350_v29  ;;  %v3587_v29 = vld [vmem:[%s4870_s3 + $0x20] ss:$8 sps:$4 sm:$0xff]  }
  0xc7   :  { %1765 = vmatpush1.bf16.msra.mxu0 %v3491_v28  ;;  %1929 = vmatpush1.bf16.msra.mxu1 %v3494_v49  ;;  %v3584_v28 = vld [vmem:[%s4870_s3 + $0x10] ss:$8 sps:$4 sm:$0xff]   ;;  %v3589_v49 = vld [vmem:[%s4870_s3 + $0x24] ss:$8 sps:$4 sm:$0xff]  }
  0xc8   :  { %1766 = vmatprep.subr.bf16.mxu0 %v3499_v30  ;;  %1930 = vmatprep.subr.bf16.mxu1 %v3502_v31  ;;  %v3590_v30 = vld [vmem:[%s4870_s3 + $0x30] ss:$8 sps:$4 sm:$0xff]   ;;  %v3595_v31 = vld [vmem:[%s4870_s3 + $0x44] ss:$8 sps:$4 sm:$0xff]  }
  0xcb   :  { %1767 = vmatpush1.bf16.msra.mxu0 %v3497_v32  ;;  %1931 = vmatpush1.bf16.msra.mxu1 %v3500_v18  ;;  %v3593_v32 = vld [vmem:[%s4870_s3 + $0x40] ss:$8 sps:$4 sm:$0xff]   ;;  %v3598_v18 = vld [vmem:[%s4870_s3 + $0x54] ss:$8 sps:$4 sm:$0xff]  }
  0xcc   :  { %1768 = vmatprep.subr.bf16.mxu0 %v3505_v33  ;;  %1932 = vmatprep.subr.bf16.mxu1 %v3508_v34  ;;  %v3596_v33 = vld [vmem:[%s4870_s3 + $0x50] ss:$8 sps:$4 sm:$0xff]   ;;  %v3601_v34 = vld [vmem:[%s4870_s3 + $0x64] ss:$8 sps:$4 sm:$0xff]  }
  0xcf   :  { %1769 = vmatpush1.bf16.msra.mxu0 %v3503_v35  ;;  %1933 = vmatpush1.bf16.msra.mxu1 %v3506_v36  ;;  %v3599_v35 = vld [vmem:[%s4870_s3 + $0x60] ss:$8 sps:$4 sm:$0xff]   ;;  %v3604_v36 = vld [vmem:[%s4870_s3 + $0x74] ss:$8 sps:$4 sm:$0xff]  }
  0xd0   :  { %1770 = vmatprep.subr.bf16.mxu0 %v3511_v37  ;;  %1934 = vmatprep.subr.bf16.mxu1 %v3514_v38  ;;  %v3602_v37 = vld [vmem:[%s4870_s3 + $0x70] ss:$8 sps:$4 sm:$0xff]   ;;  %v3607_v38 = vld [vmem:[%s4870_s3 + $0x84] ss:$8 sps:$4 sm:$0xff]  }
  0xd3   :  { %1771 = vmatpush1.bf16.msra.mxu0 %v3509_v39  ;;  %1935 = vmatpush1.bf16.msra.mxu1 %v3512_v40  ;;  %v3605_v39 = vld [vmem:[%s4870_s3 + $0x80] ss:$8 sps:$4 sm:$0xff]   ;;  %v3610_v40 = vld [vmem:[%s4870_s3 + $0x94] ss:$8 sps:$4 sm:$0xff]  }
  0xd4   :  { %1772 = vmatprep.subr.bf16.mxu0 %v3517_v41  ;;  %1936 = vmatprep.subr.bf16.mxu1 %v3520_v43  ;;  %v3608_v41 = vld [vmem:[%s4870_s3 + $0x90] ss:$8 sps:$4 sm:$0xff]   ;;  %v3613_v43 = vld [vmem:[%s4870_s3 + $0xa4] ss:$8 sps:$4 sm:$0xff]  }
  0xd7   :  { %1773 = vmatpush1.bf16.msra.mxu0 %v3515_v44  ;;  %1937 = vmatpush1.bf16.msra.mxu1 %v3518_v45  ;;  %v3611_v44 = vld [vmem:[%s4870_s3 + $0xa0] ss:$8 sps:$4 sm:$0xff]   ;;  %v3616_v45 = vld [vmem:[%s4870_s3 + $0xb4] ss:$8 sps:$4 sm:$0xff]  }
  0xd8   :  { %1774 = vmatprep.subr.bf16.mxu0 %v3523_v46  ;;  %1938 = vmatprep.subr.bf16.mxu1 %v3526_v47  ;;  %v3614_v46 = vld [vmem:[%s4870_s3 + $0xb0] ss:$8 sps:$4 sm:$0xff]   ;;  %v3619_v47 = vld [vmem:[%s4870_s3 + $0xc4] ss:$8 sps:$4 sm:$0xff]  }
  0xdb   :  { %1775 = vmatpush1.bf16.msra.mxu0 %v3521_v48  ;;  %1939 = vmatpush1.bf16.msra.mxu1 %v3524_v50  ;;  %v3617_v48 = vld [vmem:[%s4870_s3 + $0xc0] ss:$8 sps:$4 sm:$0xff]   ;;  %v3622_v50 = vld [vmem:[%s4870_s3 + $0xd4] ss:$8 sps:$4 sm:$0xff]  }
  0xdc   :  { %1776 = vmatprep.subr.bf16.mxu0 %v3529_v51  ;;  %1940 = vmatprep.subr.bf16.mxu1 %v3532_v52  ;;  %v3620_v51 = vld [vmem:[%s4870_s3 + $0xd0] ss:$8 sps:$4 sm:$0xff]   ;;  %v3625_v52 = vld [vmem:[%s4870_s3 + $0xe4] ss:$8 sps:$4 sm:$0xff]  }
  0xdf   :  { %1777 = vmatpush1.bf16.msra.mxu0 %v3527_v53  ;;  %1941 = vmatpush1.bf16.msra.mxu1 %v3530_v54  ;;  %v3623_v53 = vld [vmem:[%s4870_s3 + $0xe0] ss:$8 sps:$4 sm:$0xff]   ;;  %v3628_v54 = vld [vmem:[%s4870_s3 + $0xf4] ss:$8 sps:$4 sm:$0xff]  }
  0xe0   :  { %1778 = vmatprep.subr.bf16.mxu0 %v3535_v55  ;;  %1942 = vmatprep.subr.bf16.mxu1 %v3538_v56  ;;  %v3626_v55 = vld [vmem:[%s4870_s3 + $0xf0] ss:$8 sps:$4 sm:$0xff]   ;;  %v3631_v56 = vld [vmem:[%s4870_s3 + $0x104] ss:$8 sps:$4 sm:$0xff]  }
  0xe3   :  { %1779 = vmatpush1.bf16.msra.mxu0 %v3533_v57  ;;  %1943 = vmatpush1.bf16.msra.mxu1 %v3536_v58  ;;  %v3677_v57 = vld [vmem:[%s4871_s5 + $0x40] sm:$0xff]  }
  0xe4   :  { %1780 = vmatprep.subr.bf16.mxu0 %v3541_v59  ;;  %1944 = vmatprep.subr.bf16.mxu1 %v3544_v60  ;;  %v3678_v58 = vld [vmem:[%s4871_s5] sm:$0xff]   ;;  %v3679_v59 = vld [vmem:[%s4871_s5 + $0x48] sm:$0xff]  }
  0xe5   :  { %v3680_v60 = vld [vmem:[%s4871_s5 + $0x8] sm:$0xff]  }
  0xe7   :  { %1781 = vmatpush1.bf16.msra.mxu0 %v3539_v61  ;;  %1945 = vmatpush1.bf16.msra.mxu1 %v3542_v62  ;;  %v3681_v61 = vld [vmem:[%s4871_s5 + $0x50] sm:$0xff]  }
  0xe8   :  { %1782 = vmatprep.subr.bf16.mxu0 %v3547_v63  ;;  %1946 = vmatprep.subr.bf16.mxu1 %v3550_v0  ;;  %v3682_v62 = vld [vmem:[%s4871_s5 + $0x10] sm:$0xff]   ;;  %v3683_v63 = vld [vmem:[%s4871_s5 + $0x58] sm:$0xff]  }
  0xe9   :  { %v3684_v0 = vld [vmem:[%s4871_s5 + $0x18] sm:$0xff]  }
  0xeb   :  { %1783 = vmatpush1.bf16.msra.mxu0 %v3545_v1  ;;  %1947 = vmatpush1.bf16.msra.mxu1 %v3548_v2  ;;  %v3685_v1 = vld [vmem:[%s4871_s5 + $0x60] sm:$0xff]  }
  0xec   :  { %1784 = vmatprep.subr.bf16.mxu0 %v3553_v3  ;;  %1948 = vmatprep.subr.bf16.mxu1 %v3556_v4  ;;  %v3686_v2 = vld [vmem:[%s4871_s5 + $0x20] sm:$0xff]   ;;  %v3687_v3 = vld [vmem:[%s4871_s5 + $0x68] sm:$0xff]  }
  0xed   :  { %v3688_v4 = vld [vmem:[%s4871_s5 + $0x28] sm:$0xff]  }
  0xef   :  { %1785 = vmatpush1.bf16.msra.mxu0 %v3551_v5  ;;  %1949 = vmatpush1.bf16.msra.mxu1 %v3554_v6  ;;  %v297_v5 = vsub.s32 0, %v3876_v42  ;;  %v4704_v6 = vld [vmem:[%s4872_s2] sm:$0xf] }
  0xf0   :  { %1786 = vmatprep.subr.bf16.mxu0 %v3559_v7  ;;  %1950 = vmatprep.subr.bf16.mxu1 %v3562_v8  ;;  %v301_v7 = vsub.s32 1, %v3876_v42  ;;  %v309_v8 = vsub.s32 3, %v3876_v42 }
  0xf3   :  { %1787 = vmatpush1.bf16.msra.mxu0 %v3557_v9  ;;  %1951 = vmatpush1.bf16.msra.mxu1 %v3560_v10  ;;  %v298_v9 = vrot.slane %v4704_v6, %v297_v5  ;;  %v302_v10 = vrot.slane %v4704_v6, %v301_v7 }
  0xf4   :  { %1788 = vmatprep.subr.bf16.mxu0 %v3565_v11  ;;  %1952 = vmatprep.subr.bf16.mxu1 %v3568_v14  ;;  %v310_v11 = vrot.slane %v4704_v6, %v309_v8  ;;  %v3702_v8 = vmov 0.0  }
  0xf7   :  { %1789 = vmatpush1.bf16.msra.mxu0 %v3563_v15  ;;  %1953 = vmatpush1.bf16.msra.mxu1 %v3566_v16 }
  0xf8   :  { %1790 = vmatprep.subr.bf16.mxu0 %v3571_v17  ;;  %1954 = vmatprep.subr.bf16.mxu1 %v3574_v19 }
  0xfb   :  { %1791 = vmatpush1.bf16.msra.mxu0 %v3569_v20  ;;  %1955 = vmatpush1.bf16.msra.mxu1 %v3572_v21 }
  0xfc   :  { %1792 = vmatprep.subr.bf16.mxu0 %v3577_v22  ;;  %1956 = vmatprep.subr.bf16.mxu1 %v3580_v23 }
  0xff   :  { %1793 = vmatpush1.bf16.msra.mxu0 %v3575_v13  ;;  %1957 = vmatpush1.bf16.msra.mxu1 %v3578_v24 }
 0x100   :  { %2371 = vmatprep.subr.bf16.mxu0 %v3583_v25  ;;  %3107 = vmatprep.subr.bf16.mxu1 %v3677_v57  ;;  %v3668_v57 = vld [vmem:[%s4870_s3 + $0x1d0] ss:$8 sps:$4 sm:$0xff]  }
 0x102   :  { %1795 = vmatmul.mubr.bf16.vlgmr.msra.gmra.mrb[0].mxu0 %v4377_v26  ;;  %1959 = vmatmul.mubr.bf16.vlgmr.msra.gmra.mrb[0].mxu1 %v4377_v26  ;;  %v3592_v26 = vld [vmem:[%s4870_s3 + $0x34] ss:$8 sps:$4 sm:$0xff]  }
 0x103   :  { %2372 = vmatpush1.bf16.msra.mxu0 %v3581_v12  ;;  %3108 = vmatpush3.bf16.msra.mxu1 %v3678_v58 }
 0x104   :  { %2373 = vmatprep.subr.bf16.mxu0 %v3586_v27  ;;  %3109 = vmatprep.subr.bf16.mxu1 %v3679_v59  ;;  %v3673_v59 = vld [vmem:[%s4870_s3 + $0x1e4] ss:$8 sps:$4 sm:$0xff]  }
 0x107   :  { %2374 = vmatpush1.bf16.msra.mxu0 %v3584_v28  ;;  %3110 = vmatpush3.bf16.msra.mxu1 %v3680_v60  ;;  %v3671_v60 = vld [vmem:[%s4870_s3 + $0x1e0] ss:$8 sps:$4 sm:$0xff]  }
 0x108   :  { %2375 = vmatprep.subr.bf16.mxu0 %v3589_v49  ;;  %3111 = vmatprep.subr.bf16.mxu1 %v3681_v61  ;;  %v3629_v49 = vld [vmem:[%s4870_s3 + $0x100] ss:$8 sps:$4 sm:$0xff]  }
 0x10b   :  { %2376 = vmatpush1.bf16.msra.mxu0 %v3587_v29  ;;  %3112 = vmatpush3.bf16.msra.mxu1 %v3682_v62  ;;  %v3676_v62 = vld [vmem:[%s4870_s3 + $0x1f4] ss:$8 sps:$4 sm:$0xff]  }
 0x10c   :  { %2377 = vmatprep.subr.bf16.mxu0 %v3592_v26  ;;  %3113 = vmatprep.subr.bf16.mxu1 %v3683_v63  ;;  %v3634_v26 = vld [vmem:[%s4870_s3 + $0x114] ss:$8 sps:$4 sm:$0xff]   ;;  %v3674_v63 = vld [vmem:[%s4870_s3 + $0x1f0] ss:$8 sps:$4 sm:$0xff]  }
 0x10f   :  { %2378 = vmatpush1.bf16.msra.mxu0 %v3590_v30  ;;  %3114 = vmatpush3.bf16.msra.mxu1 %v3684_v0 }
 0x110   :  { %2379 = vmatprep.subr.bf16.mxu0 %v3595_v31  ;;  %3115 = vmatprep.subr.bf16.mxu1 %v3685_v1  ;;  %v3632_v31 = vld [vmem:[%s4870_s3 + $0x110] ss:$8 sps:$4 sm:$0xff]  }
 0x113   :  { %2380 = vmatpush1.bf16.msra.mxu0 %v3593_v32  ;;  %3116 = vmatpush3.bf16.msra.mxu1 %v3686_v2  ;;  %v3637_v32 = vld [vmem:[%s4870_s3 + $0x124] ss:$8 sps:$4 sm:$0xff]   ;;  %v3689_v2 = vld [vmem:[%s4871_s5 + $0x70] sm:$0xff]  }
 0x114   :  { %2381 = vmatprep.subr.bf16.mxu0 %v3598_v18  ;;  %3117 = vmatprep.subr.bf16.mxu1 %v3687_v3  ;;  %v3635_v18 = vld [vmem:[%s4870_s3 + $0x120] ss:$8 sps:$4 sm:$0xff]   ;;  %v3690_v3 = vld [vmem:[%s4871_s5 + $0x30] sm:$0xff]  }
 0x117   :  { %2382 = vmatpush1.bf16.msra.mxu0 %v3596_v33  ;;  %3118 = vmatpush3.bf16.msra.mxu1 %v3688_v4  ;;  %v3640_v33 = vld [vmem:[%s4870_s3 + $0x134] ss:$8 sps:$4 sm:$0xff]  }
 0x118   :  { %2383 = vmatprep.subr.bf16.mxu0 %v3601_v34  ;;  %v3638_v34 = vld [vmem:[%s4870_s3 + $0x130] ss:$8 sps:$4 sm:$0xff]   ;;  %3119 = vmatprep.subr.bf16.mxu1 %v3689_v2 }
 0x119   :  { %v3691_v4 = vld [vmem:[%s4871_s5 + $0x78] sm:$0xff]  }
 0x11b   :  { %2384 = vmatpush1.bf16.msra.mxu0 %v3599_v35  ;;  %v3643_v35 = vld [vmem:[%s4870_s3 + $0x144] ss:$8 sps:$4 sm:$0xff]   ;;  %3120 = vmatpush3.bf16.msra.mxu1 %v3690_v3 }
 0x11c   :  { %2385 = vmatprep.subr.bf16.mxu0 %v3604_v36  ;;  %v3641_v36 = vld [vmem:[%s4870_s3 + $0x140] ss:$8 sps:$4 sm:$0xff]   ;;  %3121 = vmatprep.subr.bf16.mxu1 %v3691_v4 }
 0x11f   :  { %2386 = vmatpush1.bf16.msra.mxu0 %v3602_v37  ;;  %v3646_v37 = vld [vmem:[%s4870_s3 + $0x154] ss:$8 sps:$4 sm:$0xff]  }
 0x120   :  { %2387 = vmatprep.subr.bf16.mxu0 %v3607_v38  ;;  %v3644_v38 = vld [vmem:[%s4870_s3 + $0x150] ss:$8 sps:$4 sm:$0xff]  }
 0x123   :  { %2388 = vmatpush1.bf16.msra.mxu0 %v3605_v39  ;;  %v3649_v39 = vld [vmem:[%s4870_s3 + $0x164] ss:$8 sps:$4 sm:$0xff]  }
 0x124   :  { %2389 = vmatprep.subr.bf16.mxu0 %v3610_v40  ;;  %v3647_v40 = vld [vmem:[%s4870_s3 + $0x160] ss:$8 sps:$4 sm:$0xff]  }
 0x127   :  { %2390 = vmatpush1.bf16.msra.mxu0 %v3608_v41  ;;  %v3652_v41 = vld [vmem:[%s4870_s3 + $0x174] ss:$8 sps:$4 sm:$0xff]  }
 0x128   :  { %2391 = vmatprep.subr.bf16.mxu0 %v3613_v43  ;;  %v3650_v43 = vld [vmem:[%s4870_s3 + $0x170] ss:$8 sps:$4 sm:$0xff]  }
 0x12b   :  { %2392 = vmatpush1.bf16.msra.mxu0 %v3611_v44  ;;  %v3655_v44 = vld [vmem:[%s4870_s3 + $0x184] ss:$8 sps:$4 sm:$0xff]  }
 0x12c   :  { %2393 = vmatprep.subr.bf16.mxu0 %v3616_v45  ;;  %v3653_v45 = vld [vmem:[%s4870_s3 + $0x180] ss:$8 sps:$4 sm:$0xff]  }
 0x12f   :  { %2394 = vmatpush1.bf16.msra.mxu0 %v3614_v46  ;;  %v3658_v46 = vld [vmem:[%s4870_s3 + $0x194] ss:$8 sps:$4 sm:$0xff]  }
 0x130   :  { %2395 = vmatprep.subr.bf16.mxu0 %v3619_v47  ;;  %v3656_v47 = vld [vmem:[%s4870_s3 + $0x190] ss:$8 sps:$4 sm:$0xff]  }
 0x133   :  { %2396 = vmatpush1.bf16.msra.mxu0 %v3617_v48  ;;  %v3661_v48 = vld [vmem:[%s4870_s3 + $0x1a4] ss:$8 sps:$4 sm:$0xff]  }
 0x134   :  { %2397 = vmatprep.subr.bf16.mxu0 %v3622_v50  ;;  %v3659_v50 = vld [vmem:[%s4870_s3 + $0x1a0] ss:$8 sps:$4 sm:$0xff]  }
 0x137   :  { %2398 = vmatpush1.bf16.msra.mxu0 %v3620_v51  ;;  %v3664_v51 = vld [vmem:[%s4870_s3 + $0x1b4] ss:$8 sps:$4 sm:$0xff]  }
 0x138   :  { %2399 = vmatprep.subr.bf16.mxu0 %v3625_v52  ;;  %v3662_v52 = vld [vmem:[%s4870_s3 + $0x1b0] ss:$8 sps:$4 sm:$0xff]  }
 0x13b   :  { %2400 = vmatpush1.bf16.msra.mxu0 %v3623_v53  ;;  %v3667_v53 = vld [vmem:[%s4870_s3 + $0x1c4] ss:$8 sps:$4 sm:$0xff]  }
 0x13c   :  { %2401 = vmatprep.subr.bf16.mxu0 %v3628_v54  ;;  %v3665_v54 = vld [vmem:[%s4870_s3 + $0x1c0] ss:$8 sps:$4 sm:$0xff]  }
 0x13f   :  { %2402 = vmatpush1.bf16.msra.mxu0 %v3626_v55  ;;  %v305_v55 = vsub.s32 2, %v3876_v42  ;;  %v3694_v42 = vld [vmem:[%s4873_s7 + $0x8] sm:$0xff]  }
 0x140   :  { %2412 = vmatprep.subr.bf16.mxu0 %v3631_v56  ;;  %v3670_v56 = vld [vmem:[%s4870_s3 + $0x1d4] ss:$8 sps:$4 sm:$0xff]  }
 0x141   :  { %v306_v58 = vrot.slane %v4704_v6, %v305_v55  ;;  %v3692_v6 = vld [vmem:[%s4871_s5 + $0x38] sm:$0xff]  }
 0x142   :  { %3122 = vmatpush3.bf16.msra.mxu1 %v3692_v6 }
 0x143   :  { %3138 = vmatprep.subr.bf16.mxu1 %v3702_v8 }
 0x1d5   :  { %v1796_v14 = vpop.f32.mrb[0].mxu0  ;;  %v4715_v15 = vpop.f32.mrb[0].mxu1 }
 0x1d6   :  { %v3158_v16 = vadd.f32 %v1796_v14, %v298_v9  ;;  %v1798_v17 = vpop.f32.mrb[1].mxu0  ;;  %v1962_v19 = vpop.f32.mrb[1].mxu1  ;;  %v3160_v61 = vadd.f32 %v4715_v15, %v306_v58  ;;  %v2039_v9 = vld [vmem:[%s4874_s4] sm:$0x3] }
 0x1d7   :  { %v3159_v20 = vadd.f32 %v1798_v17, %v302_v10  ;;  %v3161_v21 = vadd.f32 %v1962_v19, %v310_v11  ;;  %v1800_v22 = vpop.f32.mrb[2].mxu0  ;;  %v1964_v23 = vpop.f32.mrb[2].mxu1  ;;  %v2044_v10 = vrot.slane %v2039_v9, %v297_v5  ;;  %v2048_v11 = vrot.slane %v2039_v9, %v301_v7  ;;  %v3695_v5 = vld [vmem:[%s4873_s7 + $0x10] sm:$0xff]   ;;  %v3696_v7 = vld [vmem:[%s4873_s7 + $0x18] sm:$0xff]  }
 0x1d8   :  { %v1967_v13 = vmax.f32 %v3158_v16, 0.0  ;;  %v1801_v24 = vpop.f32.mrb[3].mxu0  ;;  %v1965_v25 = vpop.f32.mrb[3].mxu1  ;;  %v1969_v0 = vmax.f32 %v3160_v61, 0.0 }
 0x1d9   :  { %v1968_v12 = vmax.f32 %v3159_v20, 0.0  ;;  %v1970_v27 = vmax.f32 %v3161_v21, 0.0  ;;  %v3693_v24 = vld [vmem:[%s4873_s7] sm:$0xff]  }
 0x1da   :  { %v1971_v29 = vpack.c.bf16 %v1967_v13, %v1967_v13  ;;  %v1973_v1 = vpack.c.bf16 %v1969_v0, %v1969_v0 }
 0x1db   :  { %v1972_v28 = vpack.c.bf16 %v1968_v12, %v1968_v12  ;;  %v1974_v30 = vpack.c.bf16 %v1970_v27, %v1970_v27  ;;  %v3697_v12 = vld [vmem:[%s4873_s7 + $0x20] sm:$0xff]   ;;  %v3698_v27 = vld [vmem:[%s4873_s7 + $0x28] sm:$0xff]  }
 0x1dd   :  { %2403 = vmatprep.mubr.bf16.mxu0 %v1972_v28  ;;  %v3699_v28 = vld [vmem:[%s4873_s7 + $0x30] sm:$0xff]  }
 0x1de   :  { %2404 = vmatmul.mubr.bf16.vlgmr.msra.gmra.mrb[4].mxu0 %v1971_v29 }
 0x1df   :  { %2413 = vmatpush1.bf16.msra.mxu0 %v3629_v49  ;;  %2444 = vmatprep.mubr.bf16.mxu0 %v1974_v30  ;;  %v3700_v49 = vld [vmem:[%s4873_s7 + $0x38] sm:$0xff]  }
 0x1e0   :  { %2414 = vmatprep.subr.bf16.mxu0 %v3634_v26  ;;  %v3081_v26 = vld [vmem:[%s4876_s6] ss:$0 sm:$0xff] }
 0x1e3   :  { %2415 = vmatpush1.bf16.msra.mxu0 %v3632_v31 }
 0x1e4   :  { %2416 = vmatprep.subr.bf16.mxu0 %v3637_v32 }
 0x1e7   :  { %2417 = vmatpush1.bf16.msra.mxu0 %v3635_v18 }
 0x1e8   :  { %2418 = vmatprep.subr.bf16.mxu0 %v3640_v33 }
 0x1eb   :  { %2419 = vmatpush1.bf16.msra.mxu0 %v3638_v34 }
 0x1ec   :  { %2420 = vmatprep.subr.bf16.mxu0 %v3643_v35 }
 0x1ef   :  { %2421 = vmatpush1.bf16.msra.mxu0 %v3641_v36  ;;  %v3098_v36 = vld [vmem:[%s4877_s8] ss:$0 sm:$0xff] }
 0x1f0   :  { %2422 = vmatprep.subr.bf16.mxu0 %v3646_v37 }
 0x1f3   :  { %2423 = vmatpush1.bf16.msra.mxu0 %v3644_v38 }
 0x1f4   :  { %2424 = vmatprep.subr.bf16.mxu0 %v3649_v39 }
 0x1f7   :  { %2425 = vmatpush1.bf16.msra.mxu0 %v3647_v40 }
 0x1f8   :  { %2426 = vmatprep.subr.bf16.mxu0 %v3652_v41 }
 0x1fb   :  { %2427 = vmatpush1.bf16.msra.mxu0 %v3650_v43 }
 0x1fc   :  { %2428 = vmatprep.subr.bf16.mxu0 %v3655_v44 }
 0x1ff   :  { %2429 = vmatpush1.bf16.msra.mxu0 %v3653_v45 }
 0x200   :  { %2430 = vmatprep.subr.bf16.mxu0 %v3658_v46 }
 0x203   :  { %2431 = vmatpush1.bf16.msra.mxu0 %v3656_v47 }
 0x204   :  { %2432 = vmatprep.subr.bf16.mxu0 %v3661_v48 }
 0x207   :  { %2433 = vmatpush1.bf16.msra.mxu0 %v3659_v50 }
 0x208   :  { %2434 = vmatprep.subr.bf16.mxu0 %v3664_v51 }
 0x20b   :  { %2435 = vmatpush1.bf16.msra.mxu0 %v3662_v52 }
 0x20c   :  { %2436 = vmatprep.subr.bf16.mxu0 %v3667_v53 }
 0x20f   :  { %2437 = vmatpush1.bf16.msra.mxu0 %v3665_v54 }
 0x210   :  { %2438 = vmatprep.subr.bf16.mxu0 %v3670_v56 }
 0x213   :  { %2439 = vmatpush1.bf16.msra.mxu0 %v3668_v57 }
 0x214   :  { %2440 = vmatprep.subr.bf16.mxu0 %v3673_v59 }
 0x217   :  { %2441 = vmatpush1.bf16.msra.mxu0 %v3671_v60 }
 0x218   :  { %2442 = vmatprep.subr.bf16.mxu0 %v3676_v62 }
 0x21b   :  { %2443 = vmatpush1.bf16.msra.mxu0 %v3674_v63 }
 0x21e   :  { %2445 = vmatmul.mubr.bf16.vlgmr.msra.gmra.mrb[4].mxu0 %v1973_v1 }
 0x2f1   :  { %v2446_v14 = vpop.f32.mrb[4].mxu0 }
 0x2f2   :  { %v3162_v15 = vadd.f32 %v2446_v14, %v2044_v10  ;;  %v2448_v16 = vpop.f32.mrb[5].mxu0 }
 0x2f3   :  { %v3163_v17 = vadd.f32 %v2448_v16, %v2048_v11  ;;  %v2450_v19 = vpop.f32.mrb[6].mxu0 }
 0x2f4   :  { %v2453_v20 = vmax.f32 %v3162_v15, 0.0  ;;  %v2451_v21 = vpop.f32.mrb[7].mxu0 }
 0x2f5   :  { %v2454_v22 = vmax.f32 %v3163_v17, 0.0 }
 0x2f6   :  { %v2460_v25 = vpack.c.bf16 %v2453_v20, %v2453_v20 }
 0x2f7   :  { %v2457_v23 = vcombine.low %v2453_v20, %v2454_v22  ;;  %v2461_v13 = vpack.c.bf16 %v2454_v22, %v2454_v22 }
 0x2f9   :  { %2459 = vst [vmem:[%s4875_s9] sm:$0xff] %v2457_v23  ;;  %2629 = vmatprep.mubr.bf16.mxu1 %v2461_v13 }
 0x2fa   :  { %2630 = vmatmul.mubr.bf16.vlgmr.msra.gmra.mrb[4].mxu1 %v2460_v25 }
 0x2fb   :  { %3139 = vmatpush3.bf16.msra.mxu1 %v3693_v24  ;;  %3154 = vmatprep.mubr.msk.bf16.mxu1 %vm3703_vm0, %v3702_v8 }
 0x2fc   :  { %3140 = vmatprep.subr.bf16.mxu1 %v3702_v8 }
 0x2ff   :  { %3141 = vmatpush3.bf16.msra.mxu1 %v3694_v42 }
 0x300   :  { %3142 = vmatprep.subr.bf16.mxu1 %v3702_v8 }
 0x303   :  { %3143 = vmatpush3.bf16.msra.mxu1 %v3695_v5 }
 0x304   :  { %3144 = vmatprep.subr.bf16.mxu1 %v3702_v8 }
 0x307   :  { %3145 = vmatpush3.bf16.msra.mxu1 %v3696_v7 }
 0x308   :  { %3146 = vmatprep.subr.bf16.mxu1 %v3702_v8 }
 0x30b   :  { %3147 = vmatpush3.bf16.msra.mxu1 %v3697_v12 }
 0x30c   :  { %3148 = vmatprep.subr.bf16.mxu1 %v3702_v8 }
 0x30f   :  { %3149 = vmatpush3.bf16.msra.mxu1 %v3698_v27 }
 0x310   :  { %3150 = vmatprep.subr.bf16.mxu1 %v3702_v8 }
 0x313   :  { %3151 = vmatpush3.bf16.msra.mxu1 %v3699_v28 }
 0x314   :  { %3152 = vmatprep.subr.bf16.mxu1 %v3702_v8 }
 0x317   :  { %3153 = vmatpush3.bf16.msra.mxu1 %v3700_v49 }
 0x3cd   :  { %v3123_v29 = vpop.f32.mrb[4].mxu1 }
 0x3ce   :  { %v3124_v30 = vpop.f32.mrb[5].mxu1 }
 0x3cf   :  { %v3125_v31 = vadd.f32 %v3124_v30, %v3123_v29  ;;  %v3126_v32 = vpop.f32.mrb[6].mxu1 }
 0x3d0   :  { %v3127_v18 = vpop.f32.mrb[7].mxu1 }
 0x3d1   :  { %v2632_v33 = vadd.f32 %v3125_v31, %v3081_v26 }
 0x3d3   :  { %v2637_v34 = vmax.f32 %v2632_v33, 0.0 }
 0x3d5   :  { %v2638_v35 = vpack.c.bf16 %v2637_v34, %v2637_v34 }
 0x3d7   :  { %3155 = vmatmul.mubr.bf16.vlgmr.msra.gmra.mrb[8].mxu1 %v2638_v35 }
 0x4aa   :  { %v2744_v37 = vpop.f32.mrb[8].mxu1 }
 0x4ab   :  { %v2745_v38 = vadd.f32 %v3098_v36, %v2744_v37  ;;  %v3156_v39 = vpop.f32.mrb[9].mxu1 }
 0x4ac   :  { %v2747_v40 = vpop.f32.mrb[10].mxu1 }
 0x4ad   :  { %v2750_v41 = vmax.f32 %v2745_v38, 0.0  ;;  %v3157_v43 = vpop.f32.mrb[11].mxu1 }
 0x4af   :  { %2752 = vst.msk [vmem:[%s4878_s10] sm:$0xf] %vm2751_vm1, %v2750_v41 }

</bundles_post_ra>
